<compile_context>
chip_gen: v7x
topology: tpu7x:2x2x1
jax: 0.10.0
libtpu: 0.0.40
codegen_flags: <defaults>
</compile_context>

<pallas_src>
import functools
import math

import jax
import jax.numpy as jnp
from jax.experimental import pallas as pl
from jax.experimental.pallas import tpu as pltpu

# ---------------------------------------------------------------------------
# Small synthetic BERT config (checkpoint shapes are not available; see notes).
# ---------------------------------------------------------------------------
VOCAB = 100
TYPE_VOCAB = 2
MAX_POS = 16
HIDDEN = 32
N_HEADS = 2
HEAD_DIM = HIDDEN // N_HEADS
INTER = 64
N_LAYERS = 2
N_CLASSES = 4
LN_EPS = 1e-12
ATTN_SCALE = 1.0 / math.sqrt(HEAD_DIM)
MATMUL_DTYPE = jnp.bfloat16  # bf16 MXU inputs, f32 accumulation

# Row offsets inside the fused embedding table.
POS_OFF = VOCAB
TYPE_OFF = VOCAB + MAX_POS
EMB_ROWS = VOCAB + MAX_POS + TYPE_VOCAB

# Row layout of the packed per-layer bias/LN slab (width = 3*HIDDEN).
_ROW_BQKV, _ROW_B1, _ROW_BO, _ROW_LN1G, _ROW_LN1B, _ROW_B2, _ROW_LN2G, _ROW_LN2B = range(8)
# Row layout of the packed misc slab (width = HIDDEN).
_ROW_EMBG, _ROW_EMBB, _ROW_POOLB, _ROW_CLSB = range(4)


# ---------------------------------------------------------------------------
# In-kernel helpers (pure functions on VMEM-resident values)
# ---------------------------------------------------------------------------
def _ln(x, g, b):
    mu = jnp.mean(x, axis=-1, keepdims=True)
    xc = x - mu
    var = jnp.mean(xc * xc, axis=-1, keepdims=True)
    return xc * jax.lax.rsqrt(var + LN_EPS) * g + b


def _mm(x, w):
    # Dense projection on the MXU: bf16 operands (w already bf16), f32 accumulate.
    return jnp.dot(x.astype(MATMUL_DTYPE), w, preferred_element_type=jnp.float32)


def _gelu(y):
    # TODO(synk): HF BERT's default is exact erf GELU; tanh approximation used in-kernel.
    return 0.5 * y * (1.0 + jnp.tanh(0.7978845608028654 * (y + 0.044715 * y * y * y)))


# ---------------------------------------------------------------------------
# Single fused Pallas kernel:
#   embedding gather+LN -> N encoder layers -> pooler -> classifier
# ---------------------------------------------------------------------------
def _bert_fused_kernel(
    ids_ref, tt_ref,                # SMEM int32 (B, S)
    mask_ref,                       # VMEM f32  (B, S)
    emb_ref,                        # VMEM f32  (EMB_ROWS, 1, H) fused word/pos/type table
    misc_ref,                       # VMEM f32  (4, H): emb_ln_g, emb_ln_b, pool_b, cls_b(pad)
    lbias_ref,                      # VMEM f32  (L, 8, 3H): packed per-layer biases / LN params
    wqkv_ref, wo_ref, w1_ref, w2_ref,   # VMEM bf16 weight stacks (leading layer axis)
    headw_ref,                      # VMEM bf16 (2, H, H): pooler W, classifier W (lane-padded)
    o_ref,                          # VMEM f32  (B, N_CLASSES)
    x_scr, ctx_scr,                 # VMEM f32 scratch (B*S, H) each
    *, batch, seq):

    # ---- in-kernel embedding gathers (scalar ids from SMEM, rows from VMEM) ----
    for b in range(batch):
        for s in range(seq):
            tok = ids_ref[b, s]
            tt = tt_ref[b, s]
            row = emb_ref[tok] + emb_ref[POS_OFF + s] + emb_ref[TYPE_OFF + tt]   # (1, H)
            i = b * seq + s
            x_scr[i:i + 1, :] = row

    # Embedding LayerNorm (f32 elementwise).
    x = _ln(x_scr[...], misc_ref[_ROW_EMBG:_ROW_EMBG + 1, :],
            misc_ref[_ROW_EMBB:_ROW_EMBB + 1, :])                                # (B*S, H)

    # Additive key mask, computed once and hoisted out of the layer loop.
    neg = ((1.0 - mask_ref[...]) * -1e9).reshape(batch, 1, seq)                  # (B, 1, S)

    for l in range(N_LAYERS):                     # static unroll; weights stay in VMEM
        lb = lbias_ref[l]                         # (8, 3H) f32
        bqkv = lb[_ROW_BQKV:_ROW_BQKV + 1, :]
        b1 = lb[_ROW_B1:_ROW_B1 + 1, :INTER]
        bo = lb[_ROW_BO:_ROW_BO + 1, :HIDDEN]
        ln1g = lb[_ROW_LN1G:_ROW_LN1G + 1, :HIDDEN]
        ln1b = lb[_ROW_LN1B:_ROW_LN1B + 1, :HIDDEN]
        b2 = lb[_ROW_B2:_ROW_B2 + 1, :HIDDEN]
        ln2g = lb[_ROW_LN2G:_ROW_LN2G + 1, :HIDDEN]
        ln2b = lb[_ROW_LN2B:_ROW_LN2B + 1, :HIDDEN]

        # ---- fused Q/K/V projection: one (B*S, 3H) matmul ----
        qkv = _mm(x, wqkv_ref[l]) + bqkv                     # (B*S, 3H) f32
        qkv3 = qkv.reshape(batch, seq, 3 * HIDDEN)           # (B, S, 3H)

        # ---- multi-head attention, batched over B, per-head ctx written to scratch ----
        for h in range(N_HEADS):
            q = qkv3[:, :, h * HEAD_DIM:(h + 1) * HEAD_DIM].astype(MATMUL_DTYPE)
            k = qkv3[:, :, HIDDEN + h * HEAD_DIM:HIDDEN + (h + 1) * HEAD_DIM].astype(MATMUL_DTYPE)
            v = qkv3[:, :, 2 * HIDDEN + h * HEAD_DIM:
                     2 * HIDDEN + (h + 1) * HEAD_DIM].astype(MATMUL_DTYPE)
            s = jnp.einsum('bqd,bkd->bqk', q, k,
                           preferred_element_type=jnp.float32)                  # (B, S, S)
            s = s * ATTN_SCALE + neg
            s = s - jnp.max(s, axis=-1, keepdims=True)
            p = jnp.exp(s)
            p = p * pl.reciprocal(jnp.sum(p, axis=-1, keepdims=True), approx=True)
            ctx_h = jnp.einsum('bqk,bkd->bqd', p.astype(MATMUL_DTYPE), v,
                               preferred_element_type=jnp.float32)              # (B, S, D)
            ctx_scr[:, h * HEAD_DIM:(h + 1) * HEAD_DIM] = ctx_h.reshape(batch * seq, HEAD_DIM)

        # ---- output projection + residual + LayerNorm ----
        attn_out = _mm(ctx_scr[...], wo_ref[l]) + bo
        x = _ln(x + attn_out, ln1g, ln1b)

        # ---- FFN (GELU) + residual + LayerNorm; (B*S, INTER) never leaves VMEM ----
        h1 = _gelu(_mm(x, w1_ref[l]) + b1)
        ffn_out = _mm(h1, w2_ref[l]) + b2
        x = _ln(x + ffn_out, ln2g, ln2b)

    # ---- pooler + classifier on the [CLS] rows (single strided extraction) ----
    cls = x.reshape(batch, seq, HIDDEN)[:, 0:1, :].reshape(batch, HIDDEN)        # (B, H)
    pooled = jnp.tanh(_mm(cls, headw_ref[0]) + misc_ref[_ROW_POOLB:_ROW_POOLB + 1, :])
    logits = (_mm(pooled, headw_ref[1])[:, :N_CLASSES]
              + misc_ref[_ROW_CLSB:_ROW_CLSB + 1, :N_CLASSES])
    o_ref[...] = logits.astype(o_ref.dtype)                  # single (B, N_CLASSES) store


# ---------------------------------------------------------------------------
# Deterministic parameter initialization (stands in for torch.load of bert_model4)
# ---------------------------------------------------------------------------
def init_params(key):
    keys = iter(jax.random.split(key, 64))

    def w(shape):
        return 0.02 * jax.random.normal(next(keys), shape, jnp.float32)

    def stack_w(shape):
        return jnp.stack([w(shape) for _ in range(N_LAYERS)], axis=0).astype(MATMUL_DTYPE)

    def pad_row(v, width=3 * HIDDEN):
        return jnp.pad(v, (0, width - v.shape[0]))

    # One fused embedding table: word rows, then position rows, then token-type rows.
    emb_table = jnp.concatenate(
        [w((VOCAB, HIDDEN)), w((MAX_POS, HIDDEN)), w((TYPE_VOCAB, HIDDEN))], axis=0
    ).reshape(EMB_ROWS, 1, HIDDEN)

    # Packed per-layer bias / LayerNorm slab (rows padded to width 3*HIDDEN).
    lbias_one = jnp.stack([
        jnp.zeros((3 * HIDDEN,), jnp.float32),        # bqkv
        pad_row(jnp.zeros((INTER,), jnp.float32)),    # b1
        pad_row(jnp.zeros((HIDDEN,), jnp.float32)),   # bo
        pad_row(jnp.ones((HIDDEN,), jnp.float32)),    # ln1_g
        pad_row(jnp.zeros((HIDDEN,), jnp.float32)),   # ln1_b
        pad_row(jnp.zeros((HIDDEN,), jnp.float32)),   # b2
        pad_row(jnp.ones((HIDDEN,), jnp.float32)),    # ln2_g
        pad_row(jnp.zeros((HIDDEN,), jnp.float32)),   # ln2_b
    ], axis=0)
    lbias = jnp.stack([lbias_one] * N_LAYERS, axis=0)          # (L, 8, 3H)

    # Packed misc slab: emb_ln_g, emb_ln_b, pool_b, cls_b (lane-padded to HIDDEN).
    misc = jnp.stack([
        jnp.ones((HIDDEN,), jnp.float32),
        jnp.zeros((HIDDEN,), jnp.float32),
        jnp.zeros((HIDDEN,), jnp.float32),
        jnp.zeros((HIDDEN,), jnp.float32),
    ], axis=0)                                                 # (4, H)

    # Pooler + classifier weights stacked (classifier lane-padded to HIDDEN).
    head_w = jnp.zeros((2, HIDDEN, HIDDEN), jnp.float32)
    head_w = head_w.at[0].set(w((HIDDEN, HIDDEN)))
    head_w = head_w.at[1, :, :N_CLASSES].set(w((HIDDEN, N_CLASSES)))

    return {
        "emb_table": emb_table,                                # f32
        "misc": misc,                                          # f32
        "lbias": lbias,                                        # f32
        "wqkv": stack_w((HIDDEN, 3 * HIDDEN)),                 # bf16
        "wo": stack_w((HIDDEN, HIDDEN)),                       # bf16
        "w1": stack_w((HIDDEN, INTER)),                        # bf16
        "w2": stack_w((INTER, HIDDEN)),                        # bf16
        "head_w": head_w.astype(MATMUL_DTYPE),                 # bf16
    }


# ---------------------------------------------------------------------------
# TextModel.forward equivalent
# ---------------------------------------------------------------------------
def text_model_forward(params, bert_inputs, masks, token_type_ids=None):
    assert bert_inputs.shape == masks.shape, "error! bert_inputs and masks must have same shape!"
    B, S = bert_inputs.shape
    assert S <= MAX_POS, f"sequence length {S} exceeds position table ({MAX_POS})"
    if token_type_ids is None:
        token_type_ids = jnp.zeros((B, S), jnp.int32)

    smem_spec = pl.BlockSpec(memory_space=pltpu.MemorySpace.SMEM)
    vmem_spec = pl.BlockSpec(memory_space=pltpu.MemorySpace.VMEM)

    args = (
        bert_inputs.astype(jnp.int32),          # SMEM
        token_type_ids.astype(jnp.int32),       # SMEM
        masks.astype(jnp.float32),              # VMEM
        params["emb_table"], params["misc"], params["lbias"],
        params["wqkv"], params["wo"], params["w1"], params["w2"], params["head_w"],
    )

    logits = pl.pallas_call(
        functools.partial(_bert_fused_kernel, batch=B, seq=S),
        out_shape=jax.ShapeDtypeStruct((B, N_CLASSES), jnp.float32),
        in_specs=[smem_spec, smem_spec] + [vmem_spec] * 9,
        out_specs=vmem_spec,
        scratch_shapes=[
            pltpu.VMEM((B * S, HIDDEN), jnp.float32),   # activation slab (embeddings)
            pltpu.VMEM((B * S, HIDDEN), jnp.float32),   # attention context slab
        ],
    )(*args)
    return logits                               # (B, N_CLASSES)


if __name__ == "__main__":
    key = jax.random.PRNGKey(0)
    pkey, ikey = jax.random.split(key)
    params = init_params(pkey)

    B, S = 2, 8
    bert_inputs = jax.random.randint(ikey, (B, S), 0, VOCAB, dtype=jnp.int32)
    masks = jnp.ones((B, S), jnp.int32).at[1, 6:].set(0)   # second sequence is padded

    logits = jax.jit(text_model_forward)(params, bert_inputs, masks)
    jax.block_until_ready(logits)
    assert logits.shape == (B, N_CLASSES)
    assert bool(jnp.all(jnp.isfinite(logits)))
    print("KERNEL_OK")
</pallas_src>

<mosaic_0001>
module attributes {stable_mosaic.version = 11 : i64} {
  func.func @_bert_fused_kernel(%arg0: memref<2x8xi32, #tpu.memory_space<smem>>, %arg1: memref<2x8xi32, #tpu.memory_space<smem>>, %arg2: memref<2x8xf32, #tpu.memory_space<vmem>>, %arg3: memref<118x1x32xf32, #tpu.memory_space<vmem>>, %arg4: memref<4x32xf32, #tpu.memory_space<vmem>>, %arg5: memref<2x8x96xf32, #tpu.memory_space<vmem>>, %arg6: memref<2x32x96xbf16, #tpu.memory_space<vmem>>, %arg7: memref<2x32x32xbf16, #tpu.memory_space<vmem>>, %arg8: memref<2x32x64xbf16, #tpu.memory_space<vmem>>, %arg9: memref<2x64x32xbf16, #tpu.memory_space<vmem>>, %arg10: memref<2x32x32xbf16, #tpu.memory_space<vmem>>, %arg11: memref<2x4xf32, #tpu.memory_space<vmem>>, %arg12: memref<16x32xf32, #tpu.memory_space<vmem>>, %arg13: memref<16x32xf32, #tpu.memory_space<vmem>>) attributes {dimension_semantics = [], scalar_prefetch = 0 : i64, scratch_operands = 2 : i64, tpu.core_type = #tpu.core_type<tc>} {
    %c0 = arith.constant 0 : index
    %c0_0 = arith.constant 0 : index
    %0 = memref.load %arg0[%c0, %c0_0] : memref<2x8xi32, #tpu.memory_space<smem>>
    %c0_1 = arith.constant 0 : index
    %c0_2 = arith.constant 0 : index
    %1 = memref.load %arg1[%c0_1, %c0_2] : memref<2x8xi32, #tpu.memory_space<smem>>
    %2 = arith.index_cast %0 : i32 to index
    %c0_3 = arith.constant 0 : index
    %c0_4 = arith.constant 0 : index
    %3 = vector.load %arg3[%2, %c0_3, %c0_4] : memref<118x1x32xf32, #tpu.memory_space<vmem>>, vector<1x1x32xf32>
    %4 = vector.shape_cast %3 : vector<1x1x32xf32> to vector<1x32xf32>
    %c100 = arith.constant 100 : index
    %c0_5 = arith.constant 0 : index
    %c0_6 = arith.constant 0 : index
    %5 = vector.load %arg3[%c100, %c0_5, %c0_6] : memref<118x1x32xf32, #tpu.memory_space<vmem>>, vector<1x1x32xf32>
    %6 = vector.shape_cast %5 : vector<1x1x32xf32> to vector<1x32xf32>
    %7 = arith.addf %4, %6 : vector<1x32xf32>
    %c116_i32 = arith.constant 116 : i32
    %8 = arith.addi %c116_i32, %1 : i32
    %9 = arith.index_cast %8 : i32 to index
    %c0_7 = arith.constant 0 : index
    %c0_8 = arith.constant 0 : index
    %10 = vector.load %arg3[%9, %c0_7, %c0_8] : memref<118x1x32xf32, #tpu.memory_space<vmem>>, vector<1x1x32xf32>
    %11 = vector.shape_cast %10 : vector<1x1x32xf32> to vector<1x32xf32>
    %12 = arith.addf %7, %11 : vector<1x32xf32>
    %c0_9 = arith.constant 0 : index
    %c0_10 = arith.constant 0 : index
    %13 = vector.load %arg12[%c0_9, %c0_10] : memref<16x32xf32, #tpu.memory_space<vmem>>, vector<1x32xf32>
    tpu.vector_store %arg12[%c0_9, %c0_10], %12 {strides = array<i32>} : memref<16x32xf32, #tpu.memory_space<vmem>>, vector<1x32xf32>,
    %c0_11 = arith.constant 0 : index
    %c1 = arith.constant 1 : index
    %14 = memref.load %arg0[%c0_11, %c1] : memref<2x8xi32, #tpu.memory_space<smem>>
    %c0_12 = arith.constant 0 : index
    %c1_13 = arith.constant 1 : index
    %15 = memref.load %arg1[%c0_12, %c1_13] : memref<2x8xi32, #tpu.memory_space<smem>>
    %16 = arith.index_cast %14 : i32 to index
    %c0_14 = arith.constant 0 : index
    %c0_15 = arith.constant 0 : index
    %17 = vector.load %arg3[%16, %c0_14, %c0_15] : memref<118x1x32xf32, #tpu.memory_space<vmem>>, vector<1x1x32xf32>
    %18 = vector.shape_cast %17 : vector<1x1x32xf32> to vector<1x32xf32>
    %c101 = arith.constant 101 : index
    %c0_16 = arith.constant 0 : index
    %c0_17 = arith.constant 0 : index
    %19 = vector.load %arg3[%c101, %c0_16, %c0_17] : memref<118x1x32xf32, #tpu.memory_space<vmem>>, vector<1x1x32xf32>
    %20 = vector.shape_cast %19 : vector<1x1x32xf32> to vector<1x32xf32>
    %21 = arith.addf %18, %20 : vector<1x32xf32>
    %c116_i32_18 = arith.constant 116 : i32
    %22 = arith.addi %c116_i32_18, %15 : i32
    %23 = arith.index_cast %22 : i32 to index
    %c0_19 = arith.constant 0 : index
    %c0_20 = arith.constant 0 : index
    %24 = vector.load %arg3[%23, %c0_19, %c0_20] : memref<118x1x32xf32, #tpu.memory_space<vmem>>, vector<1x1x32xf32>
    %25 = vector.shape_cast %24 : vector<1x1x32xf32> to vector<1x32xf32>
    %26 = arith.addf %21, %25 : vector<1x32xf32>
    %c1_21 = arith.constant 1 : index
    %c0_22 = arith.constant 0 : index
    %27 = vector.load %arg12[%c1_21, %c0_22] : memref<16x32xf32, #tpu.memory_space<vmem>>, vector<1x32xf32>
    tpu.vector_store %arg12[%c1_21, %c0_22], %26 {strides = array<i32>} : memref<16x32xf32, #tpu.memory_space<vmem>>, vector<1x32xf32>,
    %c0_23 = arith.constant 0 : index
    %c2 = arith.constant 2 : index
    %28 = memref.load %arg0[%c0_23, %c2] : memref<2x8xi32, #tpu.memory_space<smem>>
    %c0_24 = arith.constant 0 : index
    %c2_25 = arith.constant 2 : index
    %29 = memref.load %arg1[%c0_24, %c2_25] : memref<2x8xi32, #tpu.memory_space<smem>>
    %30 = arith.index_cast %28 : i32 to index
    %c0_26 = arith.constant 0 : index
    %c0_27 = arith.constant 0 : index
    %31 = vector.load %arg3[%30, %c0_26, %c0_27] : memref<118x1x32xf32, #tpu.memory_space<vmem>>, vector<1x1x32xf32>
    %32 = vector.shape_cast %31 : vector<1x1x32xf32> to vector<1x32xf32>
    %c102 = arith.constant 102 : index
    %c0_28 = arith.constant 0 : index
    %c0_29 = arith.constant 0 : index
    %33 = vector.load %arg3[%c102, %c0_28, %c0_29] : memref<118x1x32xf32, #tpu.memory_space<vmem>>, vector<1x1x32xf32>
    %34 = vector.shape_cast %33 : vector<1x1x32xf32> to vector<1x32xf32>
    %35 = arith.addf %32, %34 : vector<1x32xf32>
    %c116_i32_30 = arith.constant 116 : i32
    %36 = arith.addi %c116_i32_30, %29 : i32
    %37 = arith.index_cast %36 : i32 to index
    %c0_31 = arith.constant 0 : index
    %c0_32 = arith.constant 0 : index
    %38 = vector.load %arg3[%37, %c0_31, %c0_32] : memref<118x1x32xf32, #tpu.memory_space<vmem>>, vector<1x1x32xf32>
    %39 = vector.shape_cast %38 : vector<1x1x32xf32> to vector<1x32xf32>
    %40 = arith.addf %35, %39 : vector<1x32xf32>
    %c2_33 = arith.constant 2 : index
    %c0_34 = arith.constant 0 : index
    %41 = vector.load %arg12[%c2_33, %c0_34] : memref<16x32xf32, #tpu.memory_space<vmem>>, vector<1x32xf32>
    tpu.vector_store %arg12[%c2_33, %c0_34], %40 {strides = array<i32>} : memref<16x32xf32, #tpu.memory_space<vmem>>, vector<1x32xf32>,
    %c0_35 = arith.constant 0 : index
    %c3 = arith.constant 3 : index
    %42 = memref.load %arg0[%c0_35, %c3] : memref<2x8xi32, #tpu.memory_space<smem>>
    %c0_36 = arith.constant 0 : index
    %c3_37 = arith.constant 3 : index
    %43 = memref.load %arg1[%c0_36, %c3_37] : memref<2x8xi32, #tpu.memory_space<smem>>
    %44 = arith.index_cast %42 : i32 to index
    %c0_38 = arith.constant 0 : index
    %c0_39 = arith.constant 0 : index
    %45 = vector.load %arg3[%44, %c0_38, %c0_39] : memref<118x1x32xf32, #tpu.memory_space<vmem>>, vector<1x1x32xf32>
    %46 = vector.shape_cast %45 : vector<1x1x32xf32> to vector<1x32xf32>
    %c103 = arith.constant 103 : index
    %c0_40 = arith.constant 0 : index
    %c0_41 = arith.constant 0 : index
    %47 = vector.load %arg3[%c103, %c0_40, %c0_41] : memref<118x1x32xf32, #tpu.memory_space<vmem>>, vector<1x1x32xf32>
    %48 = vector.shape_cast %47 : vector<1x1x32xf32> to vector<1x32xf32>
    %49 = arith.addf %46, %48 : vector<1x32xf32>
    %c116_i32_42 = arith.constant 116 : i32
    %50 = arith.addi %c116_i32_42, %43 : i32
    %51 = arith.index_cast %50 : i32 to index
    %c0_43 = arith.constant 0 : index
    %c0_44 = arith.constant 0 : index
    %52 = vector.load %arg3[%51, %c0_43, %c0_44] : memref<118x1x32xf32, #tpu.memory_space<vmem>>, vector<1x1x32xf32>
    %53 = vector.shape_cast %52 : vector<1x1x32xf32> to vector<1x32xf32>
    %54 = arith.addf %49, %53 : vector<1x32xf32>
    %c3_45 = arith.constant 3 : index
    %c0_46 = arith.constant 0 : index
    %55 = vector.load %arg12[%c3_45, %c0_46] : memref<16x32xf32, #tpu.memory_space<vmem>>, vector<1x32xf32>
    tpu.vector_store %arg12[%c3_45, %c0_46], %54 {strides = array<i32>} : memref<16x32xf32, #tpu.memory_space<vmem>>, vector<1x32xf32>,
    %c0_47 = arith.constant 0 : index
    %c4 = arith.constant 4 : index
    %56 = memref.load %arg0[%c0_47, %c4] : memref<2x8xi32, #tpu.memory_space<smem>>
    %c0_48 = arith.constant 0 : index
    %c4_49 = arith.constant 4 : index
    %57 = memref.load %arg1[%c0_48, %c4_49] : memref<2x8xi32, #tpu.memory_space<smem>>
    %58 = arith.index_cast %56 : i32 to index
    %c0_50 = arith.constant 0 : index
    %c0_51 = arith.constant 0 : index
    %59 = vector.load %arg3[%58, %c0_50, %c0_51] : memref<118x1x32xf32, #tpu.memory_space<vmem>>, vector<1x1x32xf32>
    %60 = vector.shape_cast %59 : vector<1x1x32xf32> to vector<1x32xf32>
    %c104 = arith.constant 104 : index
    %c0_52 = arith.constant 0 : index
    %c0_53 = arith.constant 0 : index
    %61 = vector.load %arg3[%c104, %c0_52, %c0_53] : memref<118x1x32xf32, #tpu.memory_space<vmem>>, vector<1x1x32xf32>
    %62 = vector.shape_cast %61 : vector<1x1x32xf32> to vector<1x32xf32>
    %63 = arith.addf %60, %62 : vector<1x32xf32>
    %c116_i32_54 = arith.constant 116 : i32
    %64 = arith.addi %c116_i32_54, %57 : i32
    %65 = arith.index_cast %64 : i32 to index
    %c0_55 = arith.constant 0 : index
    %c0_56 = arith.constant 0 : index
    %66 = vector.load %arg3[%65, %c0_55, %c0_56] : memref<118x1x32xf32, #tpu.memory_space<vmem>>, vector<1x1x32xf32>
    %67 = vector.shape_cast %66 : vector<1x1x32xf32> to vector<1x32xf32>
    %68 = arith.addf %63, %67 : vector<1x32xf32>
    %c4_57 = arith.constant 4 : index
    %c0_58 = arith.constant 0 : index
    %69 = vector.load %arg12[%c4_57, %c0_58] : memref<16x32xf32, #tpu.memory_space<vmem>>, vector<1x32xf32>
    tpu.vector_store %arg12[%c4_57, %c0_58], %68 {strides = array<i32>} : memref<16x32xf32, #tpu.memory_space<vmem>>, vector<1x32xf32>,
    %c0_59 = arith.constant 0 : index
    %c5 = arith.constant 5 : index
    %70 = memref.load %arg0[%c0_59, %c5] : memref<2x8xi32, #tpu.memory_space<smem>>
    %c0_60 = arith.constant 0 : index
    %c5_61 = arith.constant 5 : index
    %71 = memref.load %arg1[%c0_60, %c5_61] : memref<2x8xi32, #tpu.memory_space<smem>>
    %72 = arith.index_cast %70 : i32 to index
    %c0_62 = arith.constant 0 : index
    %c0_63 = arith.constant 0 : index
    %73 = vector.load %arg3[%72, %c0_62, %c0_63] : memref<118x1x32xf32, #tpu.memory_space<vmem>>, vector<1x1x32xf32>
    %74 = vector.shape_cast %73 : vector<1x1x32xf32> to vector<1x32xf32>
    %c105 = arith.constant 105 : index
    %c0_64 = arith.constant 0 : index
    %c0_65 = arith.constant 0 : index
    %75 = vector.load %arg3[%c105, %c0_64, %c0_65] : memref<118x1x32xf32, #tpu.memory_space<vmem>>, vector<1x1x32xf32>
    %76 = vector.shape_cast %75 : vector<1x1x32xf32> to vector<1x32xf32>
    %77 = arith.addf %74, %76 : vector<1x32xf32>
    %c116_i32_66 = arith.constant 116 : i32
    %78 = arith.addi %c116_i32_66, %71 : i32
    %79 = arith.index_cast %78 : i32 to index
    %c0_67 = arith.constant 0 : index
    %c0_68 = arith.constant 0 : index
    %80 = vector.load %arg3[%79, %c0_67, %c0_68] : memref<118x1x32xf32, #tpu.memory_space<vmem>>, vector<1x1x32xf32>
    %81 = vector.shape_cast %80 : vector<1x1x32xf32> to vector<1x32xf32>
    %82 = arith.addf %77, %81 : vector<1x32xf32>
    %c5_69 = arith.constant 5 : index
    %c0_70 = arith.constant 0 : index
    %83 = vector.load %arg12[%c5_69, %c0_70] : memref<16x32xf32, #tpu.memory_space<vmem>>, vector<1x32xf32>
    tpu.vector_store %arg12[%c5_69, %c0_70], %82 {strides = array<i32>} : memref<16x32xf32, #tpu.memory_space<vmem>>, vector<1x32xf32>,
    %c0_71 = arith.constant 0 : index
    %c6 = arith.constant 6 : index
    %84 = memref.load %arg0[%c0_71, %c6] : memref<2x8xi32, #tpu.memory_space<smem>>
    %c0_72 = arith.constant 0 : index
    %c6_73 = arith.constant 6 : index
    %85 = memref.load %arg1[%c0_72, %c6_73] : memref<2x8xi32, #tpu.memory_space<smem>>
    %86 = arith.index_cast %84 : i32 to index
    %c0_74 = arith.constant 0 : index
    %c0_75 = arith.constant 0 : index
    %87 = vector.load %arg3[%86, %c0_74, %c0_75] : memref<118x1x32xf32, #tpu.memory_space<vmem>>, vector<1x1x32xf32>
    %88 = vector.shape_cast %87 : vector<1x1x32xf32> to vector<1x32xf32>
    %c106 = arith.constant 106 : index
    %c0_76 = arith.constant 0 : index
    %c0_77 = arith.constant 0 : index
    %89 = vector.load %arg3[%c106, %c0_76, %c0_77] : memref<118x1x32xf32, #tpu.memory_space<vmem>>, vector<1x1x32xf32>
    %90 = vector.shape_cast %89 : vector<1x1x32xf32> to vector<1x32xf32>
    %91 = arith.addf %88, %90 : vector<1x32xf32>
    %c116_i32_78 = arith.constant 116 : i32
    %92 = arith.addi %c116_i32_78, %85 : i32
    %93 = arith.index_cast %92 : i32 to index
    %c0_79 = arith.constant 0 : index
    %c0_80 = arith.constant 0 : index
    %94 = vector.load %arg3[%93, %c0_79, %c0_80] : memref<118x1x32xf32, #tpu.memory_space<vmem>>, vector<1x1x32xf32>
    %95 = vector.shape_cast %94 : vector<1x1x32xf32> to vector<1x32xf32>
    %96 = arith.addf %91, %95 : vector<1x32xf32>
    %c6_81 = arith.constant 6 : index
    %c0_82 = arith.constant 0 : index
    %97 = vector.load %arg12[%c6_81, %c0_82] : memref<16x32xf32, #tpu.memory_space<vmem>>, vector<1x32xf32>
    tpu.vector_store %arg12[%c6_81, %c0_82], %96 {strides = array<i32>} : memref<16x32xf32, #tpu.memory_space<vmem>>, vector<1x32xf32>,
    %c0_83 = arith.constant 0 : index
    %c7 = arith.constant 7 : index
    %98 = memref.load %arg0[%c0_83, %c7] : memref<2x8xi32, #tpu.memory_space<smem>>
    %c0_84 = arith.constant 0 : index
    %c7_85 = arith.constant 7 : index
    %99 = memref.load %arg1[%c0_84, %c7_85] : memref<2x8xi32, #tpu.memory_space<smem>>
    %100 = arith.index_cast %98 : i32 to index
    %c0_86 = arith.constant 0 : index
    %c0_87 = arith.constant 0 : index
    %101 = vector.load %arg3[%100, %c0_86, %c0_87] : memref<118x1x32xf32, #tpu.memory_space<vmem>>, vector<1x1x32xf32>
    %102 = vector.shape_cast %101 : vector<1x1x32xf32> to vector<1x32xf32>
    %c107 = arith.constant 107 : index
    %c0_88 = arith.constant 0 : index
    %c0_89 = arith.constant 0 : index
    %103 = vector.load %arg3[%c107, %c0_88, %c0_89] : memref<118x1x32xf32, #tpu.memory_space<vmem>>, vector<1x1x32xf32>
    %104 = vector.shape_cast %103 : vector<1x1x32xf32> to vector<1x32xf32>
    %105 = arith.addf %102, %104 : vector<1x32xf32>
    %c116_i32_90 = arith.constant 116 : i32
    %106 = arith.addi %c116_i32_90, %99 : i32
    %107 = arith.index_cast %106 : i32 to index
    %c0_91 = arith.constant 0 : index
    %c0_92 = arith.constant 0 : index
    %108 = vector.load %arg3[%107, %c0_91, %c0_92] : memref<118x1x32xf32, #tpu.memory_space<vmem>>, vector<1x1x32xf32>
    %109 = vector.shape_cast %108 : vector<1x1x32xf32> to vector<1x32xf32>
    %110 = arith.addf %105, %109 : vector<1x32xf32>
    %c7_93 = arith.constant 7 : index
    %c0_94 = arith.constant 0 : index
    %111 = vector.load %arg12[%c7_93, %c0_94] : memref<16x32xf32, #tpu.memory_space<vmem>>, vector<1x32xf32>
    tpu.vector_store %arg12[%c7_93, %c0_94], %110 {strides = array<i32>} : memref<16x32xf32, #tpu.memory_space<vmem>>, vector<1x32xf32>,
    %c1_95 = arith.constant 1 : index
    %c0_96 = arith.constant 0 : index
    %112 = memref.load %arg0[%c1_95, %c0_96] : memref<2x8xi32, #tpu.memory_space<smem>>
    %c1_97 = arith.constant 1 : index
    %c0_98 = arith.constant 0 : index
    %113 = memref.load %arg1[%c1_97, %c0_98] : memref<2x8xi32, #tpu.memory_space<smem>>
    %114 = arith.index_cast %112 : i32 to index
    %c0_99 = arith.constant 0 : index
    %c0_100 = arith.constant 0 : index
    %115 = vector.load %arg3[%114, %c0_99, %c0_100] : memref<118x1x32xf32, #tpu.memory_space<vmem>>, vector<1x1x32xf32>
    %116 = vector.shape_cast %115 : vector<1x1x32xf32> to vector<1x32xf32>
    %c100_101 = arith.constant 100 : index
    %c0_102 = arith.constant 0 : index
    %c0_103 = arith.constant 0 : index
    %117 = vector.load %arg3[%c100_101, %c0_102, %c0_103] : memref<118x1x32xf32, #tpu.memory_space<vmem>>, vector<1x1x32xf32>
    %118 = vector.shape_cast %117 : vector<1x1x32xf32> to vector<1x32xf32>
    %119 = arith.addf %116, %118 : vector<1x32xf32>
    %c116_i32_104 = arith.constant 116 : i32
    %120 = arith.addi %c116_i32_104, %113 : i32
    %121 = arith.index_cast %120 : i32 to index
    %c0_105 = arith.constant 0 : index
    %c0_106 = arith.constant 0 : index
    %122 = vector.load %arg3[%121, %c0_105, %c0_106] : memref<118x1x32xf32, #tpu.memory_space<vmem>>, vector<1x1x32xf32>
    %123 = vector.shape_cast %122 : vector<1x1x32xf32> to vector<1x32xf32>
    %124 = arith.addf %119, %123 : vector<1x32xf32>
    %c8 = arith.constant 8 : index
    %c0_107 = arith.constant 0 : index
    %125 = vector.load %arg12[%c8, %c0_107] : memref<16x32xf32, #tpu.memory_space<vmem>>, vector<1x32xf32>
    tpu.vector_store %arg12[%c8, %c0_107], %124 {strides = array<i32>} : memref<16x32xf32, #tpu.memory_space<vmem>>, vector<1x32xf32>,
    %c1_108 = arith.constant 1 : index
    %c1_109 = arith.constant 1 : index
    %126 = memref.load %arg0[%c1_108, %c1_109] : memref<2x8xi32, #tpu.memory_space<smem>>
    %c1_110 = arith.constant 1 : index
    %c1_111 = arith.constant 1 : index
    %127 = memref.load %arg1[%c1_110, %c1_111] : memref<2x8xi32, #tpu.memory_space<smem>>
    %128 = arith.index_cast %126 : i32 to index
    %c0_112 = arith.constant 0 : index
    %c0_113 = arith.constant 0 : index
    %129 = vector.load %arg3[%128, %c0_112, %c0_113] : memref<118x1x32xf32, #tpu.memory_space<vmem>>, vector<1x1x32xf32>
    %130 = vector.shape_cast %129 : vector<1x1x32xf32> to vector<1x32xf32>
    %c101_114 = arith.constant 101 : index
    %c0_115 = arith.constant 0 : index
    %c0_116 = arith.constant 0 : index
    %131 = vector.load %arg3[%c101_114, %c0_115, %c0_116] : memref<118x1x32xf32, #tpu.memory_space<vmem>>, vector<1x1x32xf32>
    %132 = vector.shape_cast %131 : vector<1x1x32xf32> to vector<1x32xf32>
    %133 = arith.addf %130, %132 : vector<1x32xf32>
    %c116_i32_117 = arith.constant 116 : i32
    %134 = arith.addi %c116_i32_117, %127 : i32
    %135 = arith.index_cast %134 : i32 to index
    %c0_118 = arith.constant 0 : index
    %c0_119 = arith.constant 0 : index
    %136 = vector.load %arg3[%135, %c0_118, %c0_119] : memref<118x1x32xf32, #tpu.memory_space<vmem>>, vector<1x1x32xf32>
    %137 = vector.shape_cast %136 : vector<1x1x32xf32> to vector<1x32xf32>
    %138 = arith.addf %133, %137 : vector<1x32xf32>
    %c9 = arith.constant 9 : index
    %c0_120 = arith.constant 0 : index
    %139 = vector.load %arg12[%c9, %c0_120] : memref<16x32xf32, #tpu.memory_space<vmem>>, vector<1x32xf32>
    tpu.vector_store %arg12[%c9, %c0_120], %138 {strides = array<i32>} : memref<16x32xf32, #tpu.memory_space<vmem>>, vector<1x32xf32>,
    %c1_121 = arith.constant 1 : index
    %c2_122 = arith.constant 2 : index
    %140 = memref.load %arg0[%c1_121, %c2_122] : memref<2x8xi32, #tpu.memory_space<smem>>
    %c1_123 = arith.constant 1 : index
    %c2_124 = arith.constant 2 : index
    %141 = memref.load %arg1[%c1_123, %c2_124] : memref<2x8xi32, #tpu.memory_space<smem>>
    %142 = arith.index_cast %140 : i32 to index
    %c0_125 = arith.constant 0 : index
    %c0_126 = arith.constant 0 : index
    %143 = vector.load %arg3[%142, %c0_125, %c0_126] : memref<118x1x32xf32, #tpu.memory_space<vmem>>, vector<1x1x32xf32>
    %144 = vector.shape_cast %143 : vector<1x1x32xf32> to vector<1x32xf32>
    %c102_127 = arith.constant 102 : index
    %c0_128 = arith.constant 0 : index
    %c0_129 = arith.constant 0 : index
    %145 = vector.load %arg3[%c102_127, %c0_128, %c0_129] : memref<118x1x32xf32, #tpu.memory_space<vmem>>, vector<1x1x32xf32>
    %146 = vector.shape_cast %145 : vector<1x1x32xf32> to vector<1x32xf32>
    %147 = arith.addf %144, %146 : vector<1x32xf32>
    %c116_i32_130 = arith.constant 116 : i32
    %148 = arith.addi %c116_i32_130, %141 : i32
    %149 = arith.index_cast %148 : i32 to index
    %c0_131 = arith.constant 0 : index
    %c0_132 = arith.constant 0 : index
    %150 = vector.load %arg3[%149, %c0_131, %c0_132] : memref<118x1x32xf32, #tpu.memory_space<vmem>>, vector<1x1x32xf32>
    %151 = vector.shape_cast %150 : vector<1x1x32xf32> to vector<1x32xf32>
    %152 = arith.addf %147, %151 : vector<1x32xf32>
    %c10 = arith.constant 10 : index
    %c0_133 = arith.constant 0 : index
    %153 = vector.load %arg12[%c10, %c0_133] : memref<16x32xf32, #tpu.memory_space<vmem>>, vector<1x32xf32>
    tpu.vector_store %arg12[%c10, %c0_133], %152 {strides = array<i32>} : memref<16x32xf32, #tpu.memory_space<vmem>>, vector<1x32xf32>,
    %c1_134 = arith.constant 1 : index
    %c3_135 = arith.constant 3 : index
    %154 = memref.load %arg0[%c1_134, %c3_135] : memref<2x8xi32, #tpu.memory_space<smem>>
    %c1_136 = arith.constant 1 : index
    %c3_137 = arith.constant 3 : index
    %155 = memref.load %arg1[%c1_136, %c3_137] : memref<2x8xi32, #tpu.memory_space<smem>>
    %156 = arith.index_cast %154 : i32 to index
    %c0_138 = arith.constant 0 : index
    %c0_139 = arith.constant 0 : index
    %157 = vector.load %arg3[%156, %c0_138, %c0_139] : memref<118x1x32xf32, #tpu.memory_space<vmem>>, vector<1x1x32xf32>
    %158 = vector.shape_cast %157 : vector<1x1x32xf32> to vector<1x32xf32>
    %c103_140 = arith.constant 103 : index
    %c0_141 = arith.constant 0 : index
    %c0_142 = arith.constant 0 : index
    %159 = vector.load %arg3[%c103_140, %c0_141, %c0_142] : memref<118x1x32xf32, #tpu.memory_space<vmem>>, vector<1x1x32xf32>
    %160 = vector.shape_cast %159 : vector<1x1x32xf32> to vector<1x32xf32>
    %161 = arith.addf %158, %160 : vector<1x32xf32>
    %c116_i32_143 = arith.constant 116 : i32
    %162 = arith.addi %c116_i32_143, %155 : i32
    %163 = arith.index_cast %162 : i32 to index
    %c0_144 = arith.constant 0 : index
    %c0_145 = arith.constant 0 : index
    %164 = vector.load %arg3[%163, %c0_144, %c0_145] : memref<118x1x32xf32, #tpu.memory_space<vmem>>, vector<1x1x32xf32>
    %165 = vector.shape_cast %164 : vector<1x1x32xf32> to vector<1x32xf32>
    %166 = arith.addf %161, %165 : vector<1x32xf32>
    %c11 = arith.constant 11 : index
    %c0_146 = arith.constant 0 : index
    %167 = vector.load %arg12[%c11, %c0_146] : memref<16x32xf32, #tpu.memory_space<vmem>>, vector<1x32xf32>
    tpu.vector_store %arg12[%c11, %c0_146], %166 {strides = array<i32>} : memref<16x32xf32, #tpu.memory_space<vmem>>, vector<1x32xf32>,
    %c1_147 = arith.constant 1 : index
    %c4_148 = arith.constant 4 : index
    %168 = memref.load %arg0[%c1_147, %c4_148] : memref<2x8xi32, #tpu.memory_space<smem>>
    %c1_149 = arith.constant 1 : index
    %c4_150 = arith.constant 4 : index
    %169 = memref.load %arg1[%c1_149, %c4_150] : memref<2x8xi32, #tpu.memory_space<smem>>
    %170 = arith.index_cast %168 : i32 to index
    %c0_151 = arith.constant 0 : index
    %c0_152 = arith.constant 0 : index
    %171 = vector.load %arg3[%170, %c0_151, %c0_152] : memref<118x1x32xf32, #tpu.memory_space<vmem>>, vector<1x1x32xf32>
    %172 = vector.shape_cast %171 : vector<1x1x32xf32> to vector<1x32xf32>
    %c104_153 = arith.constant 104 : index
    %c0_154 = arith.constant 0 : index
    %c0_155 = arith.constant 0 : index
    %173 = vector.load %arg3[%c104_153, %c0_154, %c0_155] : memref<118x1x32xf32, #tpu.memory_space<vmem>>, vector<1x1x32xf32>
    %174 = vector.shape_cast %173 : vector<1x1x32xf32> to vector<1x32xf32>
    %175 = arith.addf %172, %174 : vector<1x32xf32>
    %c116_i32_156 = arith.constant 116 : i32
    %176 = arith.addi %c116_i32_156, %169 : i32
    %177 = arith.index_cast %176 : i32 to index
    %c0_157 = arith.constant 0 : index
    %c0_158 = arith.constant 0 : index
    %178 = vector.load %arg3[%177, %c0_157, %c0_158] : memref<118x1x32xf32, #tpu.memory_space<vmem>>, vector<1x1x32xf32>
    %179 = vector.shape_cast %178 : vector<1x1x32xf32> to vector<1x32xf32>
    %180 = arith.addf %175, %179 : vector<1x32xf32>
    %c12 = arith.constant 12 : index
    %c0_159 = arith.constant 0 : index
    %181 = vector.load %arg12[%c12, %c0_159] : memref<16x32xf32, #tpu.memory_space<vmem>>, vector<1x32xf32>
    tpu.vector_store %arg12[%c12, %c0_159], %180 {strides = array<i32>} : memref<16x32xf32, #tpu.memory_space<vmem>>, vector<1x32xf32>,
    %c1_160 = arith.constant 1 : index
    %c5_161 = arith.constant 5 : index
    %182 = memref.load %arg0[%c1_160, %c5_161] : memref<2x8xi32, #tpu.memory_space<smem>>
    %c1_162 = arith.constant 1 : index
    %c5_163 = arith.constant 5 : index
    %183 = memref.load %arg1[%c1_162, %c5_163] : memref<2x8xi32, #tpu.memory_space<smem>>
    %184 = arith.index_cast %182 : i32 to index
    %c0_164 = arith.constant 0 : index
    %c0_165 = arith.constant 0 : index
    %185 = vector.load %arg3[%184, %c0_164, %c0_165] : memref<118x1x32xf32, #tpu.memory_space<vmem>>, vector<1x1x32xf32>
    %186 = vector.shape_cast %185 : vector<1x1x32xf32> to vector<1x32xf32>
    %c105_166 = arith.constant 105 : index
    %c0_167 = arith.constant 0 : index
    %c0_168 = arith.constant 0 : index
    %187 = vector.load %arg3[%c105_166, %c0_167, %c0_168] : memref<118x1x32xf32, #tpu.memory_space<vmem>>, vector<1x1x32xf32>
    %188 = vector.shape_cast %187 : vector<1x1x32xf32> to vector<1x32xf32>
    %189 = arith.addf %186, %188 : vector<1x32xf32>
    %c116_i32_169 = arith.constant 116 : i32
    %190 = arith.addi %c116_i32_169, %183 : i32
    %191 = arith.index_cast %190 : i32 to index
    %c0_170 = arith.constant 0 : index
    %c0_171 = arith.constant 0 : index
    %192 = vector.load %arg3[%191, %c0_170, %c0_171] : memref<118x1x32xf32, #tpu.memory_space<vmem>>, vector<1x1x32xf32>
    %193 = vector.shape_cast %192 : vector<1x1x32xf32> to vector<1x32xf32>
    %194 = arith.addf %189, %193 : vector<1x32xf32>
    %c13 = arith.constant 13 : index
    %c0_172 = arith.constant 0 : index
    %195 = vector.load %arg12[%c13, %c0_172] : memref<16x32xf32, #tpu.memory_space<vmem>>, vector<1x32xf32>
    tpu.vector_store %arg12[%c13, %c0_172], %194 {strides = array<i32>} : memref<16x32xf32, #tpu.memory_space<vmem>>, vector<1x32xf32>,
    %c1_173 = arith.constant 1 : index
    %c6_174 = arith.constant 6 : index
    %196 = memref.load %arg0[%c1_173, %c6_174] : memref<2x8xi32, #tpu.memory_space<smem>>
    %c1_175 = arith.constant 1 : index
    %c6_176 = arith.constant 6 : index
    %197 = memref.load %arg1[%c1_175, %c6_176] : memref<2x8xi32, #tpu.memory_space<smem>>
    %198 = arith.index_cast %196 : i32 to index
    %c0_177 = arith.constant 0 : index
    %c0_178 = arith.constant 0 : index
    %199 = vector.load %arg3[%198, %c0_177, %c0_178] : memref<118x1x32xf32, #tpu.memory_space<vmem>>, vector<1x1x32xf32>
    %200 = vector.shape_cast %199 : vector<1x1x32xf32> to vector<1x32xf32>
    %c106_179 = arith.constant 106 : index
    %c0_180 = arith.constant 0 : index
    %c0_181 = arith.constant 0 : index
    %201 = vector.load %arg3[%c106_179, %c0_180, %c0_181] : memref<118x1x32xf32, #tpu.memory_space<vmem>>, vector<1x1x32xf32>
    %202 = vector.shape_cast %201 : vector<1x1x32xf32> to vector<1x32xf32>
    %203 = arith.addf %200, %202 : vector<1x32xf32>
    %c116_i32_182 = arith.constant 116 : i32
    %204 = arith.addi %c116_i32_182, %197 : i32
    %205 = arith.index_cast %204 : i32 to index
    %c0_183 = arith.constant 0 : index
    %c0_184 = arith.constant 0 : index
    %206 = vector.load %arg3[%205, %c0_183, %c0_184] : memref<118x1x32xf32, #tpu.memory_space<vmem>>, vector<1x1x32xf32>
    %207 = vector.shape_cast %206 : vector<1x1x32xf32> to vector<1x32xf32>
    %208 = arith.addf %203, %207 : vector<1x32xf32>
    %c14 = arith.constant 14 : index
    %c0_185 = arith.constant 0 : index
    %209 = vector.load %arg12[%c14, %c0_185] : memref<16x32xf32, #tpu.memory_space<vmem>>, vector<1x32xf32>
    tpu.vector_store %arg12[%c14, %c0_185], %208 {strides = array<i32>} : memref<16x32xf32, #tpu.memory_space<vmem>>, vector<1x32xf32>,
    %c1_186 = arith.constant 1 : index
    %c7_187 = arith.constant 7 : index
    %210 = memref.load %arg0[%c1_186, %c7_187] : memref<2x8xi32, #tpu.memory_space<smem>>
    %c1_188 = arith.constant 1 : index
    %c7_189 = arith.constant 7 : index
    %211 = memref.load %arg1[%c1_188, %c7_189] : memref<2x8xi32, #tpu.memory_space<smem>>
    %212 = arith.index_cast %210 : i32 to index
    %c0_190 = arith.constant 0 : index
    %c0_191 = arith.constant 0 : index
    %213 = vector.load %arg3[%212, %c0_190, %c0_191] : memref<118x1x32xf32, #tpu.memory_space<vmem>>, vector<1x1x32xf32>
    %214 = vector.shape_cast %213 : vector<1x1x32xf32> to vector<1x32xf32>
    %c107_192 = arith.constant 107 : index
    %c0_193 = arith.constant 0 : index
    %c0_194 = arith.constant 0 : index
    %215 = vector.load %arg3[%c107_192, %c0_193, %c0_194] : memref<118x1x32xf32, #tpu.memory_space<vmem>>, vector<1x1x32xf32>
    %216 = vector.shape_cast %215 : vector<1x1x32xf32> to vector<1x32xf32>
    %217 = arith.addf %214, %216 : vector<1x32xf32>
    %c116_i32_195 = arith.constant 116 : i32
    %218 = arith.addi %c116_i32_195, %211 : i32
    %219 = arith.index_cast %218 : i32 to index
    %c0_196 = arith.constant 0 : index
    %c0_197 = arith.constant 0 : index
    %220 = vector.load %arg3[%219, %c0_196, %c0_197] : memref<118x1x32xf32, #tpu.memory_space<vmem>>, vector<1x1x32xf32>
    %221 = vector.shape_cast %220 : vector<1x1x32xf32> to vector<1x32xf32>
    %222 = arith.addf %217, %221 : vector<1x32xf32>
    %c15 = arith.constant 15 : index
    %c0_198 = arith.constant 0 : index
    %223 = vector.load %arg12[%c15, %c0_198] : memref<16x32xf32, #tpu.memory_space<vmem>>, vector<1x32xf32>
    tpu.vector_store %arg12[%c15, %c0_198], %222 {strides = array<i32>} : memref<16x32xf32, #tpu.memory_space<vmem>>, vector<1x32xf32>,
    %c0_199 = arith.constant 0 : index
    %c0_200 = arith.constant 0 : index
    %224 = vector.load %arg12[%c0_199, %c0_200] : memref<16x32xf32, #tpu.memory_space<vmem>>, vector<16x32xf32>
    %c0_201 = arith.constant 0 : index
    %c0_202 = arith.constant 0 : index
    %225 = vector.load %arg4[%c0_201, %c0_202] : memref<4x32xf32, #tpu.memory_space<vmem>>, vector<1x32xf32>
    %c1_203 = arith.constant 1 : index
    %c0_204 = arith.constant 0 : index
    %226 = vector.load %arg4[%c1_203, %c0_204] : memref<4x32xf32, #tpu.memory_space<vmem>>, vector<1x32xf32>
    %cst = arith.constant dense<0.000000e+00> : vector<16xf32>
    %227 = vector.multi_reduction <add>, %224, %cst [1] : vector<16x32xf32> to vector<16xf32>
    %228 = vector.shape_cast %227 : vector<16xf32> to vector<16x1xf32>
    %cst_205 = arith.constant 3.200000e+01 : f32
    %229 = vector.broadcast %cst_205 : f32 to vector<16x1xf32>
    %230 = arith.divf %228, %229 : vector<16x1xf32>
    %231 = vector.broadcast %230 : vector<16x1xf32> to vector<16x32xf32>
    %232 = arith.subf %224, %231 : vector<16x32xf32>
    %233 = arith.mulf %232, %232 : vector<16x32xf32>
    %cst_206 = arith.constant dense<0.000000e+00> : vector<16xf32>
    %234 = vector.multi_reduction <add>, %233, %cst_206 [1] : vector<16x32xf32> to vector<16xf32>
    %235 = vector.shape_cast %234 : vector<16xf32> to vector<16x1xf32>
    %cst_207 = arith.constant 3.200000e+01 : f32
    %236 = vector.broadcast %cst_207 : f32 to vector<16x1xf32>
    %237 = arith.divf %235, %236 : vector<16x1xf32>
    %cst_208 = arith.constant 9.99999996E-13 : f32
    %238 = vector.broadcast %cst_208 : f32 to vector<16x1xf32>
    %239 = arith.addf %237, %238 : vector<16x1xf32>
    %240 = math.rsqrt %239 : vector<16x1xf32>
    %241 = vector.broadcast %240 : vector<16x1xf32> to vector<16x32xf32>
    %242 = arith.mulf %232, %241 : vector<16x32xf32>
    %243 = vector.broadcast %225 : vector<1x32xf32> to vector<16x32xf32>
    %244 = arith.mulf %242, %243 : vector<16x32xf32>
    %245 = vector.broadcast %226 : vector<1x32xf32> to vector<16x32xf32>
    %246 = arith.addf %244, %245 : vector<16x32xf32>
    %c0_209 = arith.constant 0 : index
    %c0_210 = arith.constant 0 : index
    %247 = vector.load %arg2[%c0_209, %c0_210] : memref<2x8xf32, #tpu.memory_space<vmem>>, vector<2x8xf32>
    %cst_211 = arith.constant 1.000000e+00 : f32
    %248 = vector.broadcast %cst_211 : f32 to vector<2x8xf32>
    %249 = arith.subf %248, %247 : vector<2x8xf32>
    %cst_212 = arith.constant -1.000000e+09 : f32
    %250 = vector.broadcast %cst_212 : f32 to vector<2x8xf32>
    %251 = arith.mulf %249, %250 : vector<2x8xf32>
    %252 = vector.shape_cast %251 : vector<2x8xf32> to vector<2x1x8xf32>
    %c0_213 = arith.constant 0 : index
    %c0_214 = arith.constant 0 : index
    %c0_215 = arith.constant 0 : index
    %253 = vector.load %arg5[%c0_213, %c0_214, %c0_215] : memref<2x8x96xf32, #tpu.memory_space<vmem>>, vector<1x8x96xf32>
    %254 = vector.shape_cast %253 : vector<1x8x96xf32> to vector<8x96xf32>
    %255 = vector.extract_strided_slice %254 {offsets = [0, 0], sizes = [1, 96], strides = [1, 1]} : vector<8x96xf32> to vector<1x96xf32>
    %256 = vector.extract_strided_slice %254 {offsets = [1, 0], sizes = [1, 64], strides = [1, 1]} : vector<8x96xf32> to vector<1x64xf32>
    %257 = vector.extract_strided_slice %254 {offsets = [2, 0], sizes = [1, 32], strides = [1, 1]} : vector<8x96xf32> to vector<1x32xf32>
    %258 = vector.extract_strided_slice %254 {offsets = [3, 0], sizes = [1, 32], strides = [1, 1]} : vector<8x96xf32> to vector<1x32xf32>
    %259 = vector.extract_strided_slice %254 {offsets = [4, 0], sizes = [1, 32], strides = [1, 1]} : vector<8x96xf32> to vector<1x32xf32>
    %260 = vector.extract_strided_slice %254 {offsets = [5, 0], sizes = [1, 32], strides = [1, 1]} : vector<8x96xf32> to vector<1x32xf32>
    %261 = vector.extract_strided_slice %254 {offsets = [6, 0], sizes = [1, 32], strides = [1, 1]} : vector<8x96xf32> to vector<1x32xf32>
    %262 = vector.extract_strided_slice %254 {offsets = [7, 0], sizes = [1, 32], strides = [1, 1]} : vector<8x96xf32> to vector<1x32xf32>
    %c0_216 = arith.constant 0 : index
    %c0_217 = arith.constant 0 : index
    %c0_218 = arith.constant 0 : index
    %263 = vector.load %arg6[%c0_216, %c0_217, %c0_218] : memref<2x32x96xbf16, #tpu.memory_space<vmem>>, vector<1x32x96xbf16>
    %264 = vector.shape_cast %263 : vector<1x32x96xbf16> to vector<32x96xbf16>
    %265 = arith.truncf %246 : vector<16x32xf32> to vector<16x32xbf16>
    %cst_219 = arith.constant dense<0.000000e+00> : vector<16x96xf32>
    %266 = tpu.matmul %265, %264, %cst_219 {dimension_numbers = #tpu.dot_dimension_numbers<[1], [0], [0], [1], [0, 0, 1, 1], [], []>} : vector<16x32xbf16>, vector<32x96xbf16>, vector<16x96xf32> -> vector<16x96xf32>
    %267 = vector.broadcast %255 : vector<1x96xf32> to vector<16x96xf32>
    %268 = arith.addf %266, %267 : vector<16x96xf32>
    %269 = vector.shape_cast %268 : vector<16x96xf32> to vector<2x8x96xf32>
    %270 = vector.extract_strided_slice %269 {offsets = [0, 0, 0], sizes = [2, 8, 16], strides = [1, 1, 1]} : vector<2x8x96xf32> to vector<2x8x16xf32>
    %271 = arith.truncf %270 : vector<2x8x16xf32> to vector<2x8x16xbf16>
    %272 = vector.extract_strided_slice %269 {offsets = [0, 0, 32], sizes = [2, 8, 16], strides = [1, 1, 1]} : vector<2x8x96xf32> to vector<2x8x16xf32>
    %273 = arith.truncf %272 : vector<2x8x16xf32> to vector<2x8x16xbf16>
    %274 = vector.extract_strided_slice %269 {offsets = [0, 0, 64], sizes = [2, 8, 16], strides = [1, 1, 1]} : vector<2x8x96xf32> to vector<2x8x16xf32>
    %275 = arith.truncf %274 : vector<2x8x16xf32> to vector<2x8x16xbf16>
    "tpu.trace_start"() <{level = 10 : i32, message = "bqd,bkd->bqk"}> : () -> ()
    %cst_220 = arith.constant dense<0.000000e+00> : vector<2x8x8xf32>
    %276 = tpu.matmul %271, %273, %cst_220 {dimension_numbers = #tpu.dot_dimension_numbers<[2], [2], [1], [1], [0, 0, 0, 1, 1, 1], [0], [0]>} : vector<2x8x16xbf16>, vector<2x8x16xbf16>, vector<2x8x8xf32> -> vector<2x8x8xf32>
    "tpu.trace_stop"() : () -> ()
    %cst_221 = arith.constant 2.500000e-01 : f32
    %277 = vector.broadcast %cst_221 : f32 to vector<2x8x8xf32>
    %278 = arith.mulf %276, %277 : vector<2x8x8xf32>
    %279 = vector.broadcast %252 : vector<2x1x8xf32> to vector<2x8x8xf32>
    %280 = arith.addf %278, %279 : vector<2x8x8xf32>
    %cst_222 = arith.constant dense<0xFF800000> : vector<2x8xf32>
    %281 = vector.multi_reduction <maximumf>, %280, %cst_222 [2] : vector<2x8x8xf32> to vector<2x8xf32>
    %282 = vector.shape_cast %281 : vector<2x8xf32> to vector<2x8x1xf32>
    %283 = vector.broadcast %282 : vector<2x8x1xf32> to vector<2x8x8xf32>
    %284 = arith.subf %280, %283 : vector<2x8x8xf32>
    %285 = math.exp %284 : vector<2x8x8xf32>
    %cst_223 = arith.constant dense<0.000000e+00> : vector<2x8xf32>
    %286 = vector.multi_reduction <add>, %285, %cst_223 [2] : vector<2x8x8xf32> to vector<2x8xf32>
    %287 = vector.shape_cast %286 : vector<2x8xf32> to vector<2x8x1xf32>
    %288 = tpu.reciprocal %287 {approx = true} : vector<2x8x1xf32> -> vector<2x8x1xf32>
    %289 = vector.broadcast %288 : vector<2x8x1xf32> to vector<2x8x8xf32>
    %290 = arith.mulf %285, %289 : vector<2x8x8xf32>
    %291 = arith.truncf %290 : vector<2x8x8xf32> to vector<2x8x8xbf16>
    "tpu.trace_start"() <{level = 10 : i32, message = "bqk,bkd->bqd"}> : () -> ()
    %cst_224 = arith.constant dense<0.000000e+00> : vector<2x8x16xf32>
    %292 = tpu.matmul %291, %275, %cst_224 {dimension_numbers = #tpu.dot_dimension_numbers<[2], [1], [1], [2], [0, 0, 0, 1, 1, 2], [0], [0]>} : vector<2x8x8xbf16>, vector<2x8x16xbf16>, vector<2x8x16xf32> -> vector<2x8x16xf32>
    "tpu.trace_stop"() : () -> ()
    %293 = vector.shape_cast %292 : vector<2x8x16xf32> to vector<16x16xf32>
    %c0_225 = arith.constant 0 : index
    %c0_226 = arith.constant 0 : index
    %294 = vector.load %arg13[%c0_225, %c0_226] : memref<16x32xf32, #tpu.memory_space<vmem>>, vector<16x16xf32>
    tpu.vector_store %arg13[%c0_225, %c0_226], %293 {strides = array<i32>} : memref<16x32xf32, #tpu.memory_space<vmem>>, vector<16x16xf32>,
    %295 = vector.extract_strided_slice %269 {offsets = [0, 0, 16], sizes = [2, 8, 16], strides = [1, 1, 1]} : vector<2x8x96xf32> to vector<2x8x16xf32>
    %296 = arith.truncf %295 : vector<2x8x16xf32> to vector<2x8x16xbf16>
    %297 = vector.extract_strided_slice %269 {offsets = [0, 0, 48], sizes = [2, 8, 16], strides = [1, 1, 1]} : vector<2x8x96xf32> to vector<2x8x16xf32>
    %298 = arith.truncf %297 : vector<2x8x16xf32> to vector<2x8x16xbf16>
    %299 = vector.extract_strided_slice %269 {offsets = [0, 0, 80], sizes = [2, 8, 16], strides = [1, 1, 1]} : vector<2x8x96xf32> to vector<2x8x16xf32>
    %300 = arith.truncf %299 : vector<2x8x16xf32> to vector<2x8x16xbf16>
    "tpu.trace_start"() <{level = 10 : i32, message = "bqd,bkd->bqk"}> : () -> ()
    %cst_227 = arith.constant dense<0.000000e+00> : vector<2x8x8xf32>
    %301 = tpu.matmul %296, %298, %cst_227 {dimension_numbers = #tpu.dot_dimension_numbers<[2], [2], [1], [1], [0, 0, 0, 1, 1, 1], [0], [0]>} : vector<2x8x16xbf16>, vector<2x8x16xbf16>, vector<2x8x8xf32> -> vector<2x8x8xf32>
    "tpu.trace_stop"() : () -> ()
    %cst_228 = arith.constant 2.500000e-01 : f32
    %302 = vector.broadcast %cst_228 : f32 to vector<2x8x8xf32>
    %303 = arith.mulf %301, %302 : vector<2x8x8xf32>
    %304 = vector.broadcast %252 : vector<2x1x8xf32> to vector<2x8x8xf32>
    %305 = arith.addf %303, %304 : vector<2x8x8xf32>
    %cst_229 = arith.constant dense<0xFF800000> : vector<2x8xf32>
    %306 = vector.multi_reduction <maximumf>, %305, %cst_229 [2] : vector<2x8x8xf32> to vector<2x8xf32>
    %307 = vector.shape_cast %306 : vector<2x8xf32> to vector<2x8x1xf32>
    %308 = vector.broadcast %307 : vector<2x8x1xf32> to vector<2x8x8xf32>
    %309 = arith.subf %305, %308 : vector<2x8x8xf32>
    %310 = math.exp %309 : vector<2x8x8xf32>
    %cst_230 = arith.constant dense<0.000000e+00> : vector<2x8xf32>
    %311 = vector.multi_reduction <add>, %310, %cst_230 [2] : vector<2x8x8xf32> to vector<2x8xf32>
    %312 = vector.shape_cast %311 : vector<2x8xf32> to vector<2x8x1xf32>
    %313 = tpu.reciprocal %312 {approx = true} : vector<2x8x1xf32> -> vector<2x8x1xf32>
    %314 = vector.broadcast %313 : vector<2x8x1xf32> to vector<2x8x8xf32>
    %315 = arith.mulf %310, %314 : vector<2x8x8xf32>
    %316 = arith.truncf %315 : vector<2x8x8xf32> to vector<2x8x8xbf16>
    "tpu.trace_start"() <{level = 10 : i32, message = "bqk,bkd->bqd"}> : () -> ()
    %cst_231 = arith.constant dense<0.000000e+00> : vector<2x8x16xf32>
    %317 = tpu.matmul %316, %300, %cst_231 {dimension_numbers = #tpu.dot_dimension_numbers<[2], [1], [1], [2], [0, 0, 0, 1, 1, 2], [0], [0]>} : vector<2x8x8xbf16>, vector<2x8x16xbf16>, vector<2x8x16xf32> -> vector<2x8x16xf32>
    "tpu.trace_stop"() : () -> ()
    %318 = vector.shape_cast %317 : vector<2x8x16xf32> to vector<16x16xf32>
    %c0_232 = arith.constant 0 : index
    %c16 = arith.constant 16 : index
    %319 = vector.load %arg13[%c0_232, %c16] : memref<16x32xf32, #tpu.memory_space<vmem>>, vector<16x16xf32>
    tpu.vector_store %arg13[%c0_232, %c16], %318 {strides = array<i32>} : memref<16x32xf32, #tpu.memory_space<vmem>>, vector<16x16xf32>,
    %c0_233 = arith.constant 0 : index
    %c0_234 = arith.constant 0 : index
    %320 = vector.load %arg13[%c0_233, %c0_234] : memref<16x32xf32, #tpu.memory_space<vmem>>, vector<16x32xf32>
    %c0_235 = arith.constant 0 : index
    %c0_236 = arith.constant 0 : index
    %c0_237 = arith.constant 0 : index
    %321 = vector.load %arg7[%c0_235, %c0_236, %c0_237] : memref<2x32x32xbf16, #tpu.memory_space<vmem>>, vector<1x32x32xbf16>
    %322 = vector.shape_cast %321 : vector<1x32x32xbf16> to vector<32x32xbf16>
    %323 = arith.truncf %320 : vector<16x32xf32> to vector<16x32xbf16>
    %cst_238 = arith.constant dense<0.000000e+00> : vector<16x32xf32>
    %324 = tpu.matmul %323, %322, %cst_238 {dimension_numbers = #tpu.dot_dimension_numbers<[1], [0], [0], [1], [0, 0, 1, 1], [], []>} : vector<16x32xbf16>, vector<32x32xbf16>, vector<16x32xf32> -> vector<16x32xf32>
    %325 = vector.broadcast %257 : vector<1x32xf32> to vector<16x32xf32>
    %326 = arith.addf %324, %325 : vector<16x32xf32>
    %327 = arith.addf %246, %326 : vector<16x32xf32>
    %cst_239 = arith.constant dense<0.000000e+00> : vector<16xf32>
    %328 = vector.multi_reduction <add>, %327, %cst_239 [1] : vector<16x32xf32> to vector<16xf32>
    %329 = vector.shape_cast %328 : vector<16xf32> to vector<16x1xf32>
    %cst_240 = arith.constant 3.200000e+01 : f32
    %330 = vector.broadcast %cst_240 : f32 to vector<16x1xf32>
    %331 = arith.divf %329, %330 : vector<16x1xf32>
    %332 = vector.broadcast %331 : vector<16x1xf32> to vector<16x32xf32>
    %333 = arith.subf %327, %332 : vector<16x32xf32>
    %334 = arith.mulf %333, %333 : vector<16x32xf32>
    %cst_241 = arith.constant dense<0.000000e+00> : vector<16xf32>
    %335 = vector.multi_reduction <add>, %334, %cst_241 [1] : vector<16x32xf32> to vector<16xf32>
    %336 = vector.shape_cast %335 : vector<16xf32> to vector<16x1xf32>
    %cst_242 = arith.constant 3.200000e+01 : f32
    %337 = vector.broadcast %cst_242 : f32 to vector<16x1xf32>
    %338 = arith.divf %336, %337 : vector<16x1xf32>
    %cst_243 = arith.constant 9.99999996E-13 : f32
    %339 = vector.broadcast %cst_243 : f32 to vector<16x1xf32>
    %340 = arith.addf %338, %339 : vector<16x1xf32>
    %341 = math.rsqrt %340 : vector<16x1xf32>
    %342 = vector.broadcast %341 : vector<16x1xf32> to vector<16x32xf32>
    %343 = arith.mulf %333, %342 : vector<16x32xf32>
    %344 = vector.broadcast %258 : vector<1x32xf32> to vector<16x32xf32>
    %345 = arith.mulf %343, %344 : vector<16x32xf32>
    %346 = vector.broadcast %259 : vector<1x32xf32> to vector<16x32xf32>
    %347 = arith.addf %345, %346 : vector<16x32xf32>
    %c0_244 = arith.constant 0 : index
    %c0_245 = arith.constant 0 : index
    %c0_246 = arith.constant 0 : index
    %348 = vector.load %arg8[%c0_244, %c0_245, %c0_246] : memref<2x32x64xbf16, #tpu.memory_space<vmem>>, vector<1x32x64xbf16>
    %349 = vector.shape_cast %348 : vector<1x32x64xbf16> to vector<32x64xbf16>
    %350 = arith.truncf %347 : vector<16x32xf32> to vector<16x32xbf16>
    %cst_247 = arith.constant dense<0.000000e+00> : vector<16x64xf32>
    %351 = tpu.matmul %350, %349, %cst_247 {dimension_numbers = #tpu.dot_dimension_numbers<[1], [0], [0], [1], [0, 0, 1, 1], [], []>} : vector<16x32xbf16>, vector<32x64xbf16>, vector<16x64xf32> -> vector<16x64xf32>
    %352 = vector.broadcast %256 : vector<1x64xf32> to vector<16x64xf32>
    %353 = arith.addf %351, %352 : vector<16x64xf32>
    %cst_248 = arith.constant 5.000000e-01 : f32
    %354 = vector.broadcast %cst_248 : f32 to vector<16x64xf32>
    %355 = arith.mulf %354, %353 : vector<16x64xf32>
    %cst_249 = arith.constant 4.471500e-02 : f32
    %356 = vector.broadcast %cst_249 : f32 to vector<16x64xf32>
    %357 = arith.mulf %356, %353 : vector<16x64xf32>
    %358 = arith.mulf %357, %353 : vector<16x64xf32>
    %359 = arith.mulf %358, %353 : vector<16x64xf32>
    %360 = arith.addf %353, %359 : vector<16x64xf32>
    %cst_250 = arith.constant 0.797884583 : f32
    %361 = vector.broadcast %cst_250 : f32 to vector<16x64xf32>
    %362 = arith.mulf %361, %360 : vector<16x64xf32>
    %363 = math.tanh %362 : vector<16x64xf32>
    %cst_251 = arith.constant 1.000000e+00 : f32
    %364 = vector.broadcast %cst_251 : f32 to vector<16x64xf32>
    %365 = arith.addf %364, %363 : vector<16x64xf32>
    %366 = arith.mulf %355, %365 : vector<16x64xf32>
    %c0_252 = arith.constant 0 : index
    %c0_253 = arith.constant 0 : index
    %c0_254 = arith.constant 0 : index
    %367 = vector.load %arg9[%c0_252, %c0_253, %c0_254] : memref<2x64x32xbf16, #tpu.memory_space<vmem>>, vector<1x64x32xbf16>
    %368 = vector.shape_cast %367 : vector<1x64x32xbf16> to vector<64x32xbf16>
    %369 = arith.truncf %366 : vector<16x64xf32> to vector<16x64xbf16>
    %cst_255 = arith.constant dense<0.000000e+00> : vector<16x32xf32>
    %370 = tpu.matmul %369, %368, %cst_255 {dimension_numbers = #tpu.dot_dimension_numbers<[1], [0], [0], [1], [0, 0, 1, 1], [], []>} : vector<16x64xbf16>, vector<64x32xbf16>, vector<16x32xf32> -> vector<16x32xf32>
    %371 = vector.broadcast %260 : vector<1x32xf32> to vector<16x32xf32>
    %372 = arith.addf %370, %371 : vector<16x32xf32>
    %373 = arith.addf %347, %372 : vector<16x32xf32>
    %cst_256 = arith.constant dense<0.000000e+00> : vector<16xf32>
    %374 = vector.multi_reduction <add>, %373, %cst_256 [1] : vector<16x32xf32> to vector<16xf32>
    %375 = vector.shape_cast %374 : vector<16xf32> to vector<16x1xf32>
    %cst_257 = arith.constant 3.200000e+01 : f32
    %376 = vector.broadcast %cst_257 : f32 to vector<16x1xf32>
    %377 = arith.divf %375, %376 : vector<16x1xf32>
    %378 = vector.broadcast %377 : vector<16x1xf32> to vector<16x32xf32>
    %379 = arith.subf %373, %378 : vector<16x32xf32>
    %380 = arith.mulf %379, %379 : vector<16x32xf32>
    %cst_258 = arith.constant dense<0.000000e+00> : vector<16xf32>
    %381 = vector.multi_reduction <add>, %380, %cst_258 [1] : vector<16x32xf32> to vector<16xf32>
    %382 = vector.shape_cast %381 : vector<16xf32> to vector<16x1xf32>
    %cst_259 = arith.constant 3.200000e+01 : f32
    %383 = vector.broadcast %cst_259 : f32 to vector<16x1xf32>
    %384 = arith.divf %382, %383 : vector<16x1xf32>
    %cst_260 = arith.constant 9.99999996E-13 : f32
    %385 = vector.broadcast %cst_260 : f32 to vector<16x1xf32>
    %386 = arith.addf %384, %385 : vector<16x1xf32>
    %387 = math.rsqrt %386 : vector<16x1xf32>
    %388 = vector.broadcast %387 : vector<16x1xf32> to vector<16x32xf32>
    %389 = arith.mulf %379, %388 : vector<16x32xf32>
    %390 = vector.broadcast %261 : vector<1x32xf32> to vector<16x32xf32>
    %391 = arith.mulf %389, %390 : vector<16x32xf32>
    %392 = vector.broadcast %262 : vector<1x32xf32> to vector<16x32xf32>
    %393 = arith.addf %391, %392 : vector<16x32xf32>
    %c1_261 = arith.constant 1 : index
    %c0_262 = arith.constant 0 : index
    %c0_263 = arith.constant 0 : index
    %394 = vector.load %arg5[%c1_261, %c0_262, %c0_263] : memref<2x8x96xf32, #tpu.memory_space<vmem>>, vector<1x8x96xf32>
    %395 = vector.shape_cast %394 : vector<1x8x96xf32> to vector<8x96xf32>
    %396 = vector.extract_strided_slice %395 {offsets = [0, 0], sizes = [1, 96], strides = [1, 1]} : vector<8x96xf32> to vector<1x96xf32>
    %397 = vector.extract_strided_slice %395 {offsets = [1, 0], sizes = [1, 64], strides = [1, 1]} : vector<8x96xf32> to vector<1x64xf32>
    %398 = vector.extract_strided_slice %395 {offsets = [2, 0], sizes = [1, 32], strides = [1, 1]} : vector<8x96xf32> to vector<1x32xf32>
    %399 = vector.extract_strided_slice %395 {offsets = [3, 0], sizes = [1, 32], strides = [1, 1]} : vector<8x96xf32> to vector<1x32xf32>
    %400 = vector.extract_strided_slice %395 {offsets = [4, 0], sizes = [1, 32], strides = [1, 1]} : vector<8x96xf32> to vector<1x32xf32>
    %401 = vector.extract_strided_slice %395 {offsets = [5, 0], sizes = [1, 32], strides = [1, 1]} : vector<8x96xf32> to vector<1x32xf32>
    %402 = vector.extract_strided_slice %395 {offsets = [6, 0], sizes = [1, 32], strides = [1, 1]} : vector<8x96xf32> to vector<1x32xf32>
    %403 = vector.extract_strided_slice %395 {offsets = [7, 0], sizes = [1, 32], strides = [1, 1]} : vector<8x96xf32> to vector<1x32xf32>
    %c1_264 = arith.constant 1 : index
    %c0_265 = arith.constant 0 : index
    %c0_266 = arith.constant 0 : index
    %404 = vector.load %arg6[%c1_264, %c0_265, %c0_266] : memref<2x32x96xbf16, #tpu.memory_space<vmem>>, vector<1x32x96xbf16>
    %405 = vector.shape_cast %404 : vector<1x32x96xbf16> to vector<32x96xbf16>
    %406 = arith.truncf %393 : vector<16x32xf32> to vector<16x32xbf16>
    %cst_267 = arith.constant dense<0.000000e+00> : vector<16x96xf32>
    %407 = tpu.matmul %406, %405, %cst_267 {dimension_numbers = #tpu.dot_dimension_numbers<[1], [0], [0], [1], [0, 0, 1, 1], [], []>} : vector<16x32xbf16>, vector<32x96xbf16>, vector<16x96xf32> -> vector<16x96xf32>
    %408 = vector.broadcast %396 : vector<1x96xf32> to vector<16x96xf32>
    %409 = arith.addf %407, %408 : vector<16x96xf32>
    %410 = vector.shape_cast %409 : vector<16x96xf32> to vector<2x8x96xf32>
    %411 = vector.extract_strided_slice %410 {offsets = [0, 0, 0], sizes = [2, 8, 16], strides = [1, 1, 1]} : vector<2x8x96xf32> to vector<2x8x16xf32>
    %412 = arith.truncf %411 : vector<2x8x16xf32> to vector<2x8x16xbf16>
    %413 = vector.extract_strided_slice %410 {offsets = [0, 0, 32], sizes = [2, 8, 16], strides = [1, 1, 1]} : vector<2x8x96xf32> to vector<2x8x16xf32>
    %414 = arith.truncf %413 : vector<2x8x16xf32> to vector<2x8x16xbf16>
    %415 = vector.extract_strided_slice %410 {offsets = [0, 0, 64], sizes = [2, 8, 16], strides = [1, 1, 1]} : vector<2x8x96xf32> to vector<2x8x16xf32>
    %416 = arith.truncf %415 : vector<2x8x16xf32> to vector<2x8x16xbf16>
    "tpu.trace_start"() <{level = 10 : i32, message = "bqd,bkd->bqk"}> : () -> ()
    %cst_268 = arith.constant dense<0.000000e+00> : vector<2x8x8xf32>
    %417 = tpu.matmul %412, %414, %cst_268 {dimension_numbers = #tpu.dot_dimension_numbers<[2], [2], [1], [1], [0, 0, 0, 1, 1, 1], [0], [0]>} : vector<2x8x16xbf16>, vector<2x8x16xbf16>, vector<2x8x8xf32> -> vector<2x8x8xf32>
    "tpu.trace_stop"() : () -> ()
    %cst_269 = arith.constant 2.500000e-01 : f32
    %418 = vector.broadcast %cst_269 : f32 to vector<2x8x8xf32>
    %419 = arith.mulf %417, %418 : vector<2x8x8xf32>
    %420 = vector.broadcast %252 : vector<2x1x8xf32> to vector<2x8x8xf32>
    %421 = arith.addf %419, %420 : vector<2x8x8xf32>
    %cst_270 = arith.constant dense<0xFF800000> : vector<2x8xf32>
    %422 = vector.multi_reduction <maximumf>, %421, %cst_270 [2] : vector<2x8x8xf32> to vector<2x8xf32>
    %423 = vector.shape_cast %422 : vector<2x8xf32> to vector<2x8x1xf32>
    %424 = vector.broadcast %423 : vector<2x8x1xf32> to vector<2x8x8xf32>
    %425 = arith.subf %421, %424 : vector<2x8x8xf32>
    %426 = math.exp %425 : vector<2x8x8xf32>
    %cst_271 = arith.constant dense<0.000000e+00> : vector<2x8xf32>
    %427 = vector.multi_reduction <add>, %426, %cst_271 [2] : vector<2x8x8xf32> to vector<2x8xf32>
    %428 = vector.shape_cast %427 : vector<2x8xf32> to vector<2x8x1xf32>
    %429 = tpu.reciprocal %428 {approx = true} : vector<2x8x1xf32> -> vector<2x8x1xf32>
    %430 = vector.broadcast %429 : vector<2x8x1xf32> to vector<2x8x8xf32>
    %431 = arith.mulf %426, %430 : vector<2x8x8xf32>
    %432 = arith.truncf %431 : vector<2x8x8xf32> to vector<2x8x8xbf16>
    "tpu.trace_start"() <{level = 10 : i32, message = "bqk,bkd->bqd"}> : () -> ()
    %cst_272 = arith.constant dense<0.000000e+00> : vector<2x8x16xf32>
    %433 = tpu.matmul %432, %416, %cst_272 {dimension_numbers = #tpu.dot_dimension_numbers<[2], [1], [1], [2], [0, 0, 0, 1, 1, 2], [0], [0]>} : vector<2x8x8xbf16>, vector<2x8x16xbf16>, vector<2x8x16xf32> -> vector<2x8x16xf32>
    "tpu.trace_stop"() : () -> ()
    %434 = vector.shape_cast %433 : vector<2x8x16xf32> to vector<16x16xf32>
    %c0_273 = arith.constant 0 : index
    %c0_274 = arith.constant 0 : index
    %435 = vector.load %arg13[%c0_273, %c0_274] : memref<16x32xf32, #tpu.memory_space<vmem>>, vector<16x16xf32>
    tpu.vector_store %arg13[%c0_273, %c0_274], %434 {strides = array<i32>} : memref<16x32xf32, #tpu.memory_space<vmem>>, vector<16x16xf32>,
    %436 = vector.extract_strided_slice %410 {offsets = [0, 0, 16], sizes = [2, 8, 16], strides = [1, 1, 1]} : vector<2x8x96xf32> to vector<2x8x16xf32>
    %437 = arith.truncf %436 : vector<2x8x16xf32> to vector<2x8x16xbf16>
    %438 = vector.extract_strided_slice %410 {offsets = [0, 0, 48], sizes = [2, 8, 16], strides = [1, 1, 1]} : vector<2x8x96xf32> to vector<2x8x16xf32>
    %439 = arith.truncf %438 : vector<2x8x16xf32> to vector<2x8x16xbf16>
    %440 = vector.extract_strided_slice %410 {offsets = [0, 0, 80], sizes = [2, 8, 16], strides = [1, 1, 1]} : vector<2x8x96xf32> to vector<2x8x16xf32>
    %441 = arith.truncf %440 : vector<2x8x16xf32> to vector<2x8x16xbf16>
    "tpu.trace_start"() <{level = 10 : i32, message = "bqd,bkd->bqk"}> : () -> ()
    %cst_275 = arith.constant dense<0.000000e+00> : vector<2x8x8xf32>
    %442 = tpu.matmul %437, %439, %cst_275 {dimension_numbers = #tpu.dot_dimension_numbers<[2], [2], [1], [1], [0, 0, 0, 1, 1, 1], [0], [0]>} : vector<2x8x16xbf16>, vector<2x8x16xbf16>, vector<2x8x8xf32> -> vector<2x8x8xf32>
    "tpu.trace_stop"() : () -> ()
    %cst_276 = arith.constant 2.500000e-01 : f32
    %443 = vector.broadcast %cst_276 : f32 to vector<2x8x8xf32>
    %444 = arith.mulf %442, %443 : vector<2x8x8xf32>
    %445 = vector.broadcast %252 : vector<2x1x8xf32> to vector<2x8x8xf32>
    %446 = arith.addf %444, %445 : vector<2x8x8xf32>
    %cst_277 = arith.constant dense<0xFF800000> : vector<2x8xf32>
    %447 = vector.multi_reduction <maximumf>, %446, %cst_277 [2] : vector<2x8x8xf32> to vector<2x8xf32>
    %448 = vector.shape_cast %447 : vector<2x8xf32> to vector<2x8x1xf32>
    %449 = vector.broadcast %448 : vector<2x8x1xf32> to vector<2x8x8xf32>
    %450 = arith.subf %446, %449 : vector<2x8x8xf32>
    %451 = math.exp %450 : vector<2x8x8xf32>
    %cst_278 = arith.constant dense<0.000000e+00> : vector<2x8xf32>
    %452 = vector.multi_reduction <add>, %451, %cst_278 [2] : vector<2x8x8xf32> to vector<2x8xf32>
    %453 = vector.shape_cast %452 : vector<2x8xf32> to vector<2x8x1xf32>
    %454 = tpu.reciprocal %453 {approx = true} : vector<2x8x1xf32> -> vector<2x8x1xf32>
    %455 = vector.broadcast %454 : vector<2x8x1xf32> to vector<2x8x8xf32>
    %456 = arith.mulf %451, %455 : vector<2x8x8xf32>
    %457 = arith.truncf %456 : vector<2x8x8xf32> to vector<2x8x8xbf16>
    "tpu.trace_start"() <{level = 10 : i32, message = "bqk,bkd->bqd"}> : () -> ()
    %cst_279 = arith.constant dense<0.000000e+00> : vector<2x8x16xf32>
    %458 = tpu.matmul %457, %441, %cst_279 {dimension_numbers = #tpu.dot_dimension_numbers<[2], [1], [1], [2], [0, 0, 0, 1, 1, 2], [0], [0]>} : vector<2x8x8xbf16>, vector<2x8x16xbf16>, vector<2x8x16xf32> -> vector<2x8x16xf32>
    "tpu.trace_stop"() : () -> ()
    %459 = vector.shape_cast %458 : vector<2x8x16xf32> to vector<16x16xf32>
    %c0_280 = arith.constant 0 : index
    %c16_281 = arith.constant 16 : index
    %460 = vector.load %arg13[%c0_280, %c16_281] : memref<16x32xf32, #tpu.memory_space<vmem>>, vector<16x16xf32>
    tpu.vector_store %arg13[%c0_280, %c16_281], %459 {strides = array<i32>} : memref<16x32xf32, #tpu.memory_space<vmem>>, vector<16x16xf32>,
    %c0_282 = arith.constant 0 : index
    %c0_283 = arith.constant 0 : index
    %461 = vector.load %arg13[%c0_282, %c0_283] : memref<16x32xf32, #tpu.memory_space<vmem>>, vector<16x32xf32>
    %c1_284 = arith.constant 1 : index
    %c0_285 = arith.constant 0 : index
    %c0_286 = arith.constant 0 : index
    %462 = vector.load %arg7[%c1_284, %c0_285, %c0_286] : memref<2x32x32xbf16, #tpu.memory_space<vmem>>, vector<1x32x32xbf16>
    %463 = vector.shape_cast %462 : vector<1x32x32xbf16> to vector<32x32xbf16>
    %464 = arith.truncf %461 : vector<16x32xf32> to vector<16x32xbf16>
    %cst_287 = arith.constant dense<0.000000e+00> : vector<16x32xf32>
    %465 = tpu.matmul %464, %463, %cst_287 {dimension_numbers = #tpu.dot_dimension_numbers<[1], [0], [0], [1], [0, 0, 1, 1], [], []>} : vector<16x32xbf16>, vector<32x32xbf16>, vector<16x32xf32> -> vector<16x32xf32>
    %466 = vector.broadcast %398 : vector<1x32xf32> to vector<16x32xf32>
    %467 = arith.addf %465, %466 : vector<16x32xf32>
    %468 = arith.addf %393, %467 : vector<16x32xf32>
    %cst_288 = arith.constant dense<0.000000e+00> : vector<16xf32>
    %469 = vector.multi_reduction <add>, %468, %cst_288 [1] : vector<16x32xf32> to vector<16xf32>
    %470 = vector.shape_cast %469 : vector<16xf32> to vector<16x1xf32>
    %cst_289 = arith.constant 3.200000e+01 : f32
    %471 = vector.broadcast %cst_289 : f32 to vector<16x1xf32>
    %472 = arith.divf %470, %471 : vector<16x1xf32>
    %473 = vector.broadcast %472 : vector<16x1xf32> to vector<16x32xf32>
    %474 = arith.subf %468, %473 : vector<16x32xf32>
    %475 = arith.mulf %474, %474 : vector<16x32xf32>
    %cst_290 = arith.constant dense<0.000000e+00> : vector<16xf32>
    %476 = vector.multi_reduction <add>, %475, %cst_290 [1] : vector<16x32xf32> to vector<16xf32>
    %477 = vector.shape_cast %476 : vector<16xf32> to vector<16x1xf32>
    %cst_291 = arith.constant 3.200000e+01 : f32
    %478 = vector.broadcast %cst_291 : f32 to vector<16x1xf32>
    %479 = arith.divf %477, %478 : vector<16x1xf32>
    %cst_292 = arith.constant 9.99999996E-13 : f32
    %480 = vector.broadcast %cst_292 : f32 to vector<16x1xf32>
    %481 = arith.addf %479, %480 : vector<16x1xf32>
    %482 = math.rsqrt %481 : vector<16x1xf32>
    %483 = vector.broadcast %482 : vector<16x1xf32> to vector<16x32xf32>
    %484 = arith.mulf %474, %483 : vector<16x32xf32>
    %485 = vector.broadcast %399 : vector<1x32xf32> to vector<16x32xf32>
    %486 = arith.mulf %484, %485 : vector<16x32xf32>
    %487 = vector.broadcast %400 : vector<1x32xf32> to vector<16x32xf32>
    %488 = arith.addf %486, %487 : vector<16x32xf32>
    %c1_293 = arith.constant 1 : index
    %c0_294 = arith.constant 0 : index
    %c0_295 = arith.constant 0 : index
    %489 = vector.load %arg8[%c1_293, %c0_294, %c0_295] : memref<2x32x64xbf16, #tpu.memory_space<vmem>>, vector<1x32x64xbf16>
    %490 = vector.shape_cast %489 : vector<1x32x64xbf16> to vector<32x64xbf16>
    %491 = arith.truncf %488 : vector<16x32xf32> to vector<16x32xbf16>
    %cst_296 = arith.constant dense<0.000000e+00> : vector<16x64xf32>
    %492 = tpu.matmul %491, %490, %cst_296 {dimension_numbers = #tpu.dot_dimension_numbers<[1], [0], [0], [1], [0, 0, 1, 1], [], []>} : vector<16x32xbf16>, vector<32x64xbf16>, vector<16x64xf32> -> vector<16x64xf32>
    %493 = vector.broadcast %397 : vector<1x64xf32> to vector<16x64xf32>
    %494 = arith.addf %492, %493 : vector<16x64xf32>
    %cst_297 = arith.constant 5.000000e-01 : f32
    %495 = vector.broadcast %cst_297 : f32 to vector<16x64xf32>
    %496 = arith.mulf %495, %494 : vector<16x64xf32>
    %cst_298 = arith.constant 4.471500e-02 : f32
    %497 = vector.broadcast %cst_298 : f32 to vector<16x64xf32>
    %498 = arith.mulf %497, %494 : vector<16x64xf32>
    %499 = arith.mulf %498, %494 : vector<16x64xf32>
    %500 = arith.mulf %499, %494 : vector<16x64xf32>
    %501 = arith.addf %494, %500 : vector<16x64xf32>
    %cst_299 = arith.constant 0.797884583 : f32
    %502 = vector.broadcast %cst_299 : f32 to vector<16x64xf32>
    %503 = arith.mulf %502, %501 : vector<16x64xf32>
    %504 = math.tanh %503 : vector<16x64xf32>
    %cst_300 = arith.constant 1.000000e+00 : f32
    %505 = vector.broadcast %cst_300 : f32 to vector<16x64xf32>
    %506 = arith.addf %505, %504 : vector<16x64xf32>
    %507 = arith.mulf %496, %506 : vector<16x64xf32>
    %c1_301 = arith.constant 1 : index
    %c0_302 = arith.constant 0 : index
    %c0_303 = arith.constant 0 : index
    %508 = vector.load %arg9[%c1_301, %c0_302, %c0_303] : memref<2x64x32xbf16, #tpu.memory_space<vmem>>, vector<1x64x32xbf16>
    %509 = vector.shape_cast %508 : vector<1x64x32xbf16> to vector<64x32xbf16>
    %510 = arith.truncf %507 : vector<16x64xf32> to vector<16x64xbf16>
    %cst_304 = arith.constant dense<0.000000e+00> : vector<16x32xf32>
    %511 = tpu.matmul %510, %509, %cst_304 {dimension_numbers = #tpu.dot_dimension_numbers<[1], [0], [0], [1], [0, 0, 1, 1], [], []>} : vector<16x64xbf16>, vector<64x32xbf16>, vector<16x32xf32> -> vector<16x32xf32>
    %512 = vector.broadcast %401 : vector<1x32xf32> to vector<16x32xf32>
    %513 = arith.addf %511, %512 : vector<16x32xf32>
    %514 = arith.addf %488, %513 : vector<16x32xf32>
    %cst_305 = arith.constant dense<0.000000e+00> : vector<16xf32>
    %515 = vector.multi_reduction <add>, %514, %cst_305 [1] : vector<16x32xf32> to vector<16xf32>
    %516 = vector.shape_cast %515 : vector<16xf32> to vector<16x1xf32>
    %cst_306 = arith.constant 3.200000e+01 : f32
    %517 = vector.broadcast %cst_306 : f32 to vector<16x1xf32>
    %518 = arith.divf %516, %517 : vector<16x1xf32>
    %519 = vector.broadcast %518 : vector<16x1xf32> to vector<16x32xf32>
    %520 = arith.subf %514, %519 : vector<16x32xf32>
    %521 = arith.mulf %520, %520 : vector<16x32xf32>
    %cst_307 = arith.constant dense<0.000000e+00> : vector<16xf32>
    %522 = vector.multi_reduction <add>, %521, %cst_307 [1] : vector<16x32xf32> to vector<16xf32>
    %523 = vector.shape_cast %522 : vector<16xf32> to vector<16x1xf32>
    %cst_308 = arith.constant 3.200000e+01 : f32
    %524 = vector.broadcast %cst_308 : f32 to vector<16x1xf32>
    %525 = arith.divf %523, %524 : vector<16x1xf32>
    %cst_309 = arith.constant 9.99999996E-13 : f32
    %526 = vector.broadcast %cst_309 : f32 to vector<16x1xf32>
    %527 = arith.addf %525, %526 : vector<16x1xf32>
    %528 = math.rsqrt %527 : vector<16x1xf32>
    %529 = vector.broadcast %528 : vector<16x1xf32> to vector<16x32xf32>
    %530 = arith.mulf %520, %529 : vector<16x32xf32>
    %531 = vector.broadcast %402 : vector<1x32xf32> to vector<16x32xf32>
    %532 = arith.mulf %530, %531 : vector<16x32xf32>
    %533 = vector.broadcast %403 : vector<1x32xf32> to vector<16x32xf32>
    %534 = arith.addf %532, %533 : vector<16x32xf32>
    %535 = vector.shape_cast %534 : vector<16x32xf32> to vector<2x8x32xf32>
    %536 = vector.extract_strided_slice %535 {offsets = [0, 0, 0], sizes = [2, 1, 32], strides = [1, 1, 1]} : vector<2x8x32xf32> to vector<2x1x32xf32>
    %537 = vector.shape_cast %536 : vector<2x1x32xf32> to vector<2x32xf32>
    %c0_310 = arith.constant 0 : index
    %c0_311 = arith.constant 0 : index
    %c0_312 = arith.constant 0 : index
    %538 = vector.load %arg10[%c0_310, %c0_311, %c0_312] : memref<2x32x32xbf16, #tpu.memory_space<vmem>>, vector<1x32x32xbf16>
    %539 = vector.shape_cast %538 : vector<1x32x32xbf16> to vector<32x32xbf16>
    %540 = arith.truncf %537 : vector<2x32xf32> to vector<2x32xbf16>
    %cst_313 = arith.constant dense<0.000000e+00> : vector<2x32xf32>
    %541 = tpu.matmul %540, %539, %cst_313 {dimension_numbers = #tpu.dot_dimension_numbers<[1], [0], [0], [1], [0, 0, 1, 1], [], []>} : vector<2x32xbf16>, vector<32x32xbf16>, vector<2x32xf32> -> vector<2x32xf32>
    %c2_314 = arith.constant 2 : index
    %c0_315 = arith.constant 0 : index
    %542 = vector.load %arg4[%c2_314, %c0_315] : memref<4x32xf32, #tpu.memory_space<vmem>>, vector<1x32xf32>
    %543 = vector.broadcast %542 : vector<1x32xf32> to vector<2x32xf32>
    %544 = arith.addf %541, %543 : vector<2x32xf32>
    %545 = math.tanh %544 : vector<2x32xf32>
    %c1_316 = arith.constant 1 : index
    %c0_317 = arith.constant 0 : index
    %c0_318 = arith.constant 0 : index
    %546 = vector.load %arg10[%c1_316, %c0_317, %c0_318] : memref<2x32x32xbf16, #tpu.memory_space<vmem>>, vector<1x32x32xbf16>
    %547 = vector.shape_cast %546 : vector<1x32x32xbf16> to vector<32x32xbf16>
    %548 = arith.truncf %545 : vector<2x32xf32> to vector<2x32xbf16>
    %cst_319 = arith.constant dense<0.000000e+00> : vector<2x32xf32>
    %549 = tpu.matmul %548, %547, %cst_319 {dimension_numbers = #tpu.dot_dimension_numbers<[1], [0], [0], [1], [0, 0, 1, 1], [], []>} : vector<2x32xbf16>, vector<32x32xbf16>, vector<2x32xf32> -> vector<2x32xf32>
    %550 = vector.extract_strided_slice %549 {offsets = [0, 0], sizes = [2, 4], strides = [1, 1]} : vector<2x32xf32> to vector<2x4xf32>
    %c3_320 = arith.constant 3 : index
    %c0_321 = arith.constant 0 : index
    %551 = vector.load %arg4[%c3_320, %c0_321] : memref<4x32xf32, #tpu.memory_space<vmem>>, vector<1x4xf32>
    %552 = vector.broadcast %551 : vector<1x4xf32> to vector<2x4xf32>
    %553 = arith.addf %550, %552 : vector<2x4xf32>
    %c0_322 = arith.constant 0 : index
    %c0_323 = arith.constant 0 : index
    %554 = vector.load %arg11[%c0_322, %c0_323] : memref<2x4xf32, #tpu.memory_space<vmem>>, vector<2x4xf32>
    tpu.vector_store %arg11[%c0_322, %c0_323], %553 {strides = array<i32>} : memref<2x4xf32, #tpu.memory_space<vmem>>, vector<2x4xf32>,
    return
  }
}

</mosaic_0001>

<bundles_post_ra>
// kernel: text_model_forward.1
= control target key start
LH: loop header
LB: loop body
LE: loop exit
PB: predicated region body
PF: predicated region fallthrough
CT: control target
= control target key end

     0   :  { %s3478_s0 = inlined_call_operand.vmem [shape: s32[2,8], index: 0, kind: input, shape index: {}]   ;;  %s3479_s1 = inlined_call_operand.vmem [shape: s32[2,8], index: 1, kind: input, shape index: {}]   ;;  %s3480_s2 = inlined_call_operand.vmem [shape: f32[2,8], index: 2, kind: input, shape index: {}]   ;;  %s3481_s3 = inlined_call_operand.vmem [shape: f32[118,1,32], index: 3, kind: input, shape index: {}]   ;;  %s3482_s4 = inlined_call_operand.vmem [shape: f32[4,32], index: 4, kind: input, shape index: {}]   ;;  %s3483_s5 = inlined_call_operand.vmem [shape: f32[2,8,96], index: 5, kind: input, shape index: {}]   ;;  %s3484_s6 = inlined_call_operand.vmem [shape: bf16[2,32,96], index: 6, kind: input, shape index: {}]   ;;  %s3485_s7 = inlined_call_operand.vmem [shape: bf16[2,32,32], index: 7, kind: input, shape index: {}]   ;;  %s3486_s8 = inlined_call_operand.vmem [shape: bf16[2,32,64], index: 8, kind: input, shape index: {}]   ;;  %s3487_s9 = inlined_call_operand.vmem [shape: bf16[2,64,32], index: 9, kind: input, shape index: {}]   ;;  %s3488_s10 = inlined_call_operand.vmem [shape: bf16[2,32,32], index: 10, kind: input, shape index: {}]   ;;  %s3489_s11 = inlined_call_operand.hbm [shape: f32[2,4], index: 11, kind: output, shape index: {}]  }
   0x1   :  { %3493 = sst [smem:[#allocation13_spill]] %s3487_s9 }
   0x2   :  { %3494 = sst [smem:[#allocation14_spill]] %s3488_s10 }
   0x3   :  { %3495 = sst [smem:[#allocation15_spill]] %s3489_s11 }
   0x4   :  { %16 = vsyncpa [#allocation6], 0 }
   0x5   :  { %17 = vsyncpa [#allocation8], 0 }
   0x6   :  { %18 = vsyncpa [#allocation5], 0  ;;  %s25_s19 = sshll.u32 %s3478_s0, 4  ;;  %s35_s22 = sshll.u32 %s3479_s1, 4  ;;  %s26_s19 = int_to_ptr.vmem [resolvable:$true] %s25_s19  ;;  %s36_s22 = int_to_ptr.vmem [resolvable:$true] %s35_s22 }
   0x7   :  { %s2711_s23 = scalar_lea.vmem %s26_s19, 32  ;;  %p2716_p1 = scmp.lt.s32.totalorder %s26_s19, %s26_s19 }
   0x8   :  { %p2712_p0 = scmp.ne.s32.totalorder %s26_s19, %s2711_s23  ;;  %p2717_p2 = scmp.lt.s32.totalorder %s2711_s23, %s2711_s23 }
   0xa   :  { %p2718_p3 = por %p2717_p2, %p2716_p1 }
   0xc   :  { %p2719_p4 = pnand %p2718_p3, %p2712_p0 }
   0xe   :  { %2722 = shalt.err (!%p2719_p4)
}
   0xf   :  { %s2763_s24 = smov [#allocation4]   ;;  %s2723_s25 = scalar_lea.vmem %s36_s22, 32 }
  0x10   :  { %28 = dma.vmem_to_smem %s26_s19, 32, %s2763_s24, [#allocation6]  }
  0x11   :  { %p2724_p5 = scmp.ne.s32.totalorder %s36_s22, %s2723_s25  ;;  %p2728_p6 = scmp.lt.s32.totalorder %s36_s22, %s36_s22 }
  0x12   :  { %p2729_p7 = scmp.lt.s32.totalorder %s2723_s25, %s2723_s25 }
  0x14   :  { %p2730_p8 = por %p2729_p7, %p2728_p6 }
  0x16   :  { %p2731_p9 = pnand %p2730_p8, %p2724_p5 }
  0x18   :  { %2734 = shalt.err (!%p2731_p9)
}
  0x19   :  { %s2764_s0 = smov [#allocation7]  }
  0x1a   :  { %38 = dma.vmem_to_smem %s36_s22, 32, %s2764_s0, [#allocation8]  }
  0x1b   :  { %2757 = dma.done.wait [#allocation6], 32  }
  0x1c   :  { %2758 = vsyncadd [#allocation6], 4294967264 }
  0x1d   :  { %2759 = dma.done.wait [#allocation8], 32  }
  0x1e   :  { %2760 = vsyncadd [#allocation8], 4294967264 }
  0x1f   :  { %63 = sfence }
  0x20   :  { %s65_s1 = sld [smem:[#allocation4]]  ;;  %s2224_s27 = sld [smem:[#allocation4 + $0x1]]  ;;  %v2222_v0 = vld [vmem:[%s3481_s3 + $0x64] sm:$0x1]  ;;  %vm76_vm0 = vcmask 253952   ;;  %vm254_vm1 = vcmask 261120  }
  0x21   :  { %s66_s26 = sld [smem:[#allocation7]]  ;;  %s2225_s28 = sld [smem:[#allocation7 + $0x1]]  ;;  %v2226_v1 = vld [vmem:[%s3481_s3 + $0x65] sm:$0x1]  ;;  %v2230_v4 = vld [vmem:[%s3481_s3 + $0x66] sm:$0x1] }
  0x22   :  { %s2228_s29 = sld [smem:[#allocation4 + $0x2]]  ;;  %s2841_s12 = sld [smem:[#allocation4 + $0x3]]  ;;  %v2234_v8 = vld [vmem:[%s3481_s3 + $0x67] sm:$0x1]  ;;  %v2238_v12 = vld [vmem:[%s3481_s3 + $0x68] sm:$0x1] }
  0x23   :  { %s2229_s30 = sld [smem:[#allocation7 + $0x2]]  ;;  %s2843_s13 = sld [smem:[#allocation7 + $0x3]]  ;;  %v2242_v17 = vld [vmem:[%s3481_s3 + $0x69] sm:$0x1]  ;;  %v2246_v30 = vld [vmem:[%s3481_s3 + $0x6a] sm:$0x1] }
  0x24   :  { %s2845_s14 = sld [smem:[#allocation4 + $0x4]]  ;;  %s2852_s18 = sld [smem:[#allocation4 + $0x5]]  ;;  %v2250_v31 = vld [vmem:[%s3481_s3 + $0x6b] sm:$0x1]  ;;  %v2254_v32 = vld [vmem:[%s3481_s3 + $0x64] sm:$0x1] }
  0x25   :  { %s2847_s15 = sld [smem:[#allocation7 + $0x4]]  ;;  %s2854_s19 = sld [smem:[#allocation7 + $0x5]]  ;;  %v2258_v33 = vld [vmem:[%s3481_s3 + $0x65] sm:$0x1]  ;;  %v2262_v35 = vld [vmem:[%s3481_s3 + $0x66] sm:$0x1] }
  0x26   :  { %s67_s22 = scalar_lea.vmem %s3481_s3, %s65_s1  ;;  %s80_s10 = scalar_lea.vmem %s3481_s3, %s2224_s27  ;;  %v2266_v39 = vld [vmem:[%s3481_s3 + $0x67] sm:$0x1]  ;;  %v2270_v60 = vld [vmem:[%s3481_s3 + $0x68] sm:$0x1]  ;;  %v2274_v61 = vld [vmem:[%s3481_s3 + $0x69] sm:$0x1] }
  0x27   :  { %s2175_s25 = scalar_lea.vmem %s3481_s3, %s66_s26  ;;  %v68_v2 = vld [vmem:[%s67_s22] sm:$0x1]  ;;  %s2178_s1 = scalar_lea.vmem %s3481_s3, %s2225_s28  ;;  %v2278_v62 = vld [vmem:[%s3481_s3 + $0x6a] sm:$0x1]  ;;  %v2282_v63 = vld [vmem:[%s3481_s3 + $0x6b] sm:$0x1] }
  0x28   :  { %v2223_v3 = vld [vmem:[%s2175_s25 + $0x74] sm:$0x1]  ;;  %v71_v5 = vadd.f32 %v2222_v0, %v68_v2  ;;  %v81_v6 = vld [vmem:[%s80_s10] sm:$0x1]  ;;  %s92_s22 = scalar_lea.vmem %s3481_s3, %s2228_s29  ;;  %s104_s16 = scalar_lea.vmem %s3481_s3, %s2841_s12  ;;  %vm2766_vm2 = vmmov 0   ;;  %vm391_vm3 = vcmask 130048  }
  0x29   :  { %v2227_v7 = vld [vmem:[%s2178_s1 + $0x74] sm:$0x1]  ;;  %s2181_s27 = scalar_lea.vmem %s3481_s3, %s2229_s30  ;;  %v84_v9 = vadd.f32 %v2226_v1, %v81_v6  ;;  %v93_v10 = vld [vmem:[%s92_s22] sm:$0x1]  ;;  %s2184_s29 = scalar_lea.vmem %s3481_s3, %s2843_s13  ;;  %vm501_vm4 = vcmask 64512   ;;  %vm531_vm5 = vcmask 1043456  }
  0x2a   :  { %v2231_v11 = vld [vmem:[%s2181_s27 + $0x74] sm:$0x1]  ;;  %v75_v13 = vadd.f32 %v2223_v3, %v71_v5  ;;  %v96_v14 = vadd.f32 %v2230_v4, %v93_v10  ;;  %v105_v15 = vld [vmem:[%s104_s16] sm:$0x1]  ;;  %s116_s11 = scalar_lea.vmem %s3481_s3, %s2845_s14  ;;  %s128_s0 = scalar_lea.vmem %s3481_s3, %s2852_s18  ;;  %vm857_vm6 = vcmask 261248   ;;  %vm1087_vm7 = vcmask 523264  }
  0x2b   :  { %v2235_v16 = vld [vmem:[%s2184_s29 + $0x74] sm:$0x1]  ;;  %s2187_s12 = scalar_lea.vmem %s3481_s3, %s2847_s15  ;;  %v88_v18 = vadd.f32 %v2227_v7, %v84_v9  ;;  %v108_v19 = vadd.f32 %v2234_v8, %v105_v15  ;;  %v117_v20 = vld [vmem:[%s116_s11] sm:$0x1]  ;;  %s2190_s14 = scalar_lea.vmem %s3481_s3, %s2854_s19  ;;  %vm2030_vm8 = vcmask 1041409   ;;  %vm2156_vm9 = vcmask 25600  }
  0x2c   :  { %v2239_v21 = vld [vmem:[%s2187_s12 + $0x74] sm:$0x1]  ;;  %77 = vst.msk [vmem:[#allocation2] sm:$0x1] %vm76_vm0, %v75_v13  ;;  %v100_v22 = vadd.f32 %v2231_v11, %v96_v14  ;;  %v120_v23 = vadd.f32 %v2238_v12, %v117_v20  ;;  %v129_v24 = vld [vmem:[%s128_s0] sm:$0x1] }
  0x2d   :  { %v2243_v25 = vld [vmem:[%s2190_s14 + $0x74] sm:$0x1]  ;;  %s2244_s15 = sld [smem:[#allocation4 + $0x6]]  ;;  %89 = vst.msk [vmem:[#allocation2 + $0x1] sm:$0x1] %vm76_vm0, %v88_v18  ;;  %v112_v26 = vadd.f32 %v2235_v16, %v108_v19  ;;  %v132_v27 = vadd.f32 %v2242_v17, %v129_v24  ;;  %s2248_s16 = sld [smem:[#allocation4 + $0x7]] }
  0x2e   :  { %s2245_s10 = sld [smem:[#allocation7 + $0x6]]  ;;  %101 = vst.msk [vmem:[#allocation2 + $0x2] sm:$0x1] %vm76_vm0, %v100_v22  ;;  %v124_v28 = vadd.f32 %v2239_v21, %v120_v23  ;;  %s2916_s18 = sld [smem:[#allocation7 + $0x7]] }
  0x2f   :  { %s2918_s17 = sld [smem:[#allocation4 + $0x80]]  ;;  %113 = vst.msk [vmem:[#allocation2 + $0x3] sm:$0x1] %vm76_vm0, %v112_v26  ;;  %v136_v29 = vadd.f32 %v2243_v25, %v132_v27  ;;  %s2926_s1 = sld [smem:[#allocation4 + $0x81]] }
  0x30   :  { %s2924_s29 = sld [smem:[#allocation7 + $0x80]]  ;;  %125 = vst.msk [vmem:[#allocation2 + $0x4] sm:$0x1] %vm76_vm0, %v124_v28  ;;  %s2932_s23 = sld [smem:[#allocation7 + $0x81]] }
  0x31   :  { %s2934_s11 = sld [smem:[#allocation4 + $0x82]]  ;;  %137 = vst.msk [vmem:[#allocation2 + $0x5] sm:$0x1] %vm76_vm0, %v136_v29  ;;  %s2942_s24 = sld [smem:[#allocation4 + $0x83]] }
  0x32   :  { %s2940_s12 = sld [smem:[#allocation7 + $0x82]]  ;;  %s2950_s28 = sld [smem:[#allocation7 + $0x83]] }
  0x33   :  { %s140_s27 = scalar_lea.vmem %s3481_s3, %s2244_s15  ;;  %s152_s26 = scalar_lea.vmem %s3481_s3, %s2248_s16 }
  0x34   :  { %v141_v34 = vld [vmem:[%s140_s27] sm:$0x1]  ;;  %s2193_s20 = scalar_lea.vmem %s3481_s3, %s2245_s10  ;;  %s2196_s27 = scalar_lea.vmem %s3481_s3, %s2916_s18 }
  0x35   :  { %v144_v36 = vadd.f32 %v2246_v30, %v141_v34  ;;  %v2247_v37 = vld [vmem:[%s2193_s20 + $0x74] sm:$0x1]  ;;  %v153_v38 = vld [vmem:[%s152_s26] sm:$0x1]  ;;  %s164_s10 = scalar_lea.vmem %s3481_s3, %s2918_s17  ;;  %s175_s18 = scalar_lea.vmem %s3481_s3, %s2926_s1 }
  0x36   :  { %v156_v40 = vadd.f32 %v2250_v31, %v153_v38  ;;  %v2251_v41 = vld [vmem:[%s2196_s27 + $0x74] sm:$0x1]  ;;  %v165_v42 = vld [vmem:[%s164_s10] sm:$0x1]  ;;  %s2199_s21 = scalar_lea.vmem %s3481_s3, %s2924_s29  ;;  %s2202_s25 = scalar_lea.vmem %s3481_s3, %s2932_s23  ;;  %v2765_v31 = vmov 0.0  }
  0x37   :  { %v148_v43 = vadd.f32 %v2247_v37, %v144_v36  ;;  %v167_v44 = vadd.f32 %v2254_v32, %v165_v42  ;;  %v2255_v45 = vld [vmem:[%s2199_s21 + $0x74] sm:$0x1]  ;;  %v176_v46 = vld [vmem:[%s175_s18] sm:$0x1]  ;;  %s186_s27 = scalar_lea.vmem %s3481_s3, %s2934_s11  ;;  %s197_s14 = scalar_lea.vmem %s3481_s3, %s2942_s24  ;;  %2429 = vmatprep.subr.bf16.mxu0 %v2765_v31  ;;  %2437 = vmatprep.subr.bf16.mxu1 %v2765_v31  ;;  %v2626_v32 = vld [vmem:[%s3484_s6 + $0x8] sm:$0xff]  }
  0x38   :  { %v160_v47 = vadd.f32 %v2251_v41, %v156_v40  ;;  %v178_v48 = vadd.f32 %v2258_v33, %v176_v46  ;;  %v2259_v49 = vld [vmem:[%s2202_s25 + $0x74] sm:$0x1]  ;;  %v187_v50 = vld [vmem:[%s186_s27] sm:$0x1]  ;;  %s2205_s0 = scalar_lea.vmem %s3481_s3, %s2940_s12  ;;  %s2208_s19 = scalar_lea.vmem %s3481_s3, %s2950_s28  ;;  %2433 = vmatprep.mubr.msk.bf16.mxu0 %vm2766_vm2, %v2765_v31  ;;  %2439 = vmatprep.mubr.msk.bf16.mxu1 %vm2766_vm2, %v2765_v31 }
  0x39   :  { %149 = vst.msk [vmem:[#allocation2 + $0x6] sm:$0x1] %vm76_vm0, %v148_v43  ;;  %v171_v51 = vadd.f32 %v2255_v45, %v167_v44  ;;  %v189_v52 = vadd.f32 %v2262_v35, %v187_v50  ;;  %v2263_v53 = vld [vmem:[%s2205_s0 + $0x74] sm:$0x1]  ;;  %v198_v54 = vld [vmem:[%s197_s14] sm:$0x1]  ;;  %v301_v50 = vlaneseq }
  0x3a   :  { %s2268_s16 = sld [smem:[#allocation4 + $0x84]]  ;;  %161 = vst.msk [vmem:[#allocation2 + $0x7] sm:$0x1] %vm76_vm0, %v160_v47  ;;  %v182_v55 = vadd.f32 %v2259_v49, %v178_v48  ;;  %v200_v56 = vadd.f32 %v2266_v39, %v198_v54  ;;  %v2267_v57 = vld [vmem:[%s2208_s19 + $0x74] sm:$0x1]  ;;  %s2272_s20 = sld [smem:[#allocation4 + $0x85]] }
  0x3b   :  { %s2269_s12 = sld [smem:[#allocation7 + $0x84]]  ;;  %172 = vst.msk [vmem:[#allocation2 + $0x8] sm:$0x1] %vm76_vm0, %v171_v51  ;;  %v193_v58 = vadd.f32 %v2263_v53, %v189_v52  ;;  %s2273_s24 = sld [smem:[#allocation7 + $0x85]]  ;;  %v2625_v30 = vld [vmem:[%s3484_s6] sm:$0xff]   ;;  %v3079_v51 = vshrl.u32 %v301_v50, 7 }
  0x3c   :  { %s2276_s21 = sld [smem:[#allocation4 + $0x86]]  ;;  %183 = vst.msk [vmem:[#allocation2 + $0x9] sm:$0x1] %vm76_vm0, %v182_v55  ;;  %v204_v59 = vadd.f32 %v2267_v57, %v200_v56  ;;  %s2280_s18 = sld [smem:[#allocation4 + $0x87]]  ;;  %2430 = vmatpush3.bf16.msra.mxu0 %v2625_v30  ;;  %v2284_v41 = vld [vmem:[%s3482_s4] ss:$0 sm:$0xff] }
  0x3d   :  { %s2277_s28 = sld [smem:[#allocation7 + $0x86]]  ;;  %194 = vst.msk [vmem:[#allocation2 + $0xa] sm:$0x1] %vm76_vm0, %v193_v58  ;;  %s2281_s25 = sld [smem:[#allocation7 + $0x87]]  ;;  %2431 = vmatprep.subr.bf16.mxu0 %v2765_v31  ;;  %v2285_v45 = vld [vmem:[%s3482_s4 + $0x1] ss:$0 sm:$0xff] }
  0x3e   :  { %205 = vst.msk [vmem:[#allocation2 + $0xb] sm:$0x1] %vm76_vm0, %v204_v59  ;;  %v3082_v52 = vsub.s32 0, %v3079_v51  ;;  %v3087_v53 = vld [vmem:[%s3483_s5] sm:$0xff]  ;;  %s2767_s26 = smov 96   ;;  %s2770_s22 = smov 80  }
  0x3f   :  { %s2771_s15 = smov 112   ;;  %s2774_s27 = smov [#allocation9]  }
  0x40   :  { %s208_s1 = scalar_lea.vmem %s3481_s3, %s2268_s16  ;;  %s219_s30 = scalar_lea.vmem %s3481_s3, %s2272_s20  ;;  %2432 = vmatpush3.bf16.msra.mxu0 %v2626_v32  ;;  %v329_v54 = vrot.slane %v3087_v53, %v3082_v52 }
  0x41   :  { %v209_v0 = vld [vmem:[%s208_s1] sm:$0x1]  ;;  %s2211_s23 = scalar_lea.vmem %s3481_s3, %s2269_s12  ;;  %s2214_s16 = scalar_lea.vmem %s3481_s3, %s2273_s24  ;;  %2443 = vmatprep.subr.bf16.mxu0 %v2765_v31 }
  0x42   :  { %v250_v1 = vld [vmem:[#allocation2] sm:$0xff]  ;;  %v211_v2 = vadd.f32 %v2270_v60, %v209_v0  ;;  %v2271_v3 = vld [vmem:[%s2211_s23 + $0x74] sm:$0x1]  ;;  %s230_s13 = scalar_lea.vmem %s3481_s3, %s2276_s21  ;;  %s241_s0 = scalar_lea.vmem %s3481_s3, %s2280_s18 }
  0x43   :  { %v220_v4 = vld [vmem:[%s219_s30] sm:$0x1]  ;;  %v255_v5 = vsel %vm254_vm1, %v250_v1, 0.0  ;;  %v2275_v7 = vld [vmem:[%s2214_s16 + $0x74] sm:$0x1]  ;;  %s2217_s20 = scalar_lea.vmem %s3481_s3, %s2277_s28  ;;  %s2220_s9 = scalar_lea.vmem %s3481_s3, %s2281_s25 }
  0x44   :  { %v222_v6 = vadd.f32 %v2274_v61, %v220_v4  ;;  %v231_v8 = vld [vmem:[%s230_s13] sm:$0x1]  ;;  %256 = vadd.xlane.f32.xlu0 %v255_v5  ;;  %v215_v9 = vadd.f32 %v2271_v3, %v211_v2  ;;  %v2279_v11 = vld [vmem:[%s2217_s20 + $0x74] sm:$0x1]  ;;  %v2768_v3 = vmov 1966171168  }
  0x45   :  { %v233_v10 = vadd.f32 %v2278_v62, %v231_v8  ;;  %v242_v12 = vld [vmem:[%s241_s0] sm:$0x1]  ;;  %v2283_v15 = vld [vmem:[%s2220_s9 + $0x74] sm:$0x1]  ;;  %v299_v4 = vunpack.c.l.s4 %v2768_v3  ;;  %s2772_s13 = smov 48   ;;  %s2773_s1 = smov 16  }
  0x46   :  { %v226_v13 = vadd.f32 %v2275_v7, %v222_v6  ;;  %v244_v14 = vadd.f32 %v2282_v63, %v242_v12  ;;  %216 = vst.msk [vmem:[#allocation2 + $0xc] sm:$0x1] %vm76_vm0, %v215_v9  ;;  %v294_v5 = vld [vmem:[%s3480_s2] sm:$0x3]  ;;  %s2769_s2 = smov 64   ;;  %s3496_s18 = sld [smem:[#allocation13_spill]] }
  0x47   :  { %v237_v16 = vadd.f32 %v2279_v11, %v233_v10  ;;  %v295_v6 = vsub.f32 1.0, %v294_v5  ;;  %v300_v7 = vunpack.c.0.s8 %v299_v4  ;;  %s3497_s25 = sld [smem:[#allocation14_spill]] }
  0x48   :  { %227 = vst.msk [vmem:[#allocation2 + $0xd] sm:$0x1] %vm76_vm0, %v226_v13  ;;  %v248_v17 = vadd.f32 %v2283_v15, %v244_v14 }
  0x49   :  { %238 = vst.msk [vmem:[#allocation2 + $0xe] sm:$0x1] %vm76_vm0, %v237_v16  ;;  %v296_v8 = vmul.f32 -1e+09, %v295_v6  ;;  %v303_v9 = vsub.s32 %v300_v7, %v3079_v51 }
  0x4a   :  { %249 = vst.msk [vmem:[#allocation2 + $0xf] sm:$0x1] %vm76_vm0, %v248_v17 }
  0x4b   :  { %v304_v10 = vrot.slane %v296_v8, %v303_v9 }
  0x4d   :  { %v305_v11 = vcombine.high %v304_v10, %v304_v10  ;;  %v312_v12 = vrot.slane %v304_v10, %v303_v9 }
  0x4f   :  { %v319_v13 = vrot.slane %v305_v11, %v303_v9  ;;  %v3116_v14 = vrot.slane %v312_v12, %v3082_v52 }
  0x51   :  { %v251_v18 = vld [vmem:[#allocation2 + $0x8] sm:$0xff] }
  0x52   :  { %v258_v19 = vsel %vm254_vm1, %v251_v18, 0.0 }
  0x53   :  { %259 = vadd.xlane.f32.xlu0 %v258_v19 }
  0xd1   :  { %v257_v20 = vpop.xlane.xlu0 %256 }
  0xd2   :  { %v262_v21 = vmul.f32 0.03125, %v257_v20 }
  0xd4   :  { %v264_v22 = vsub.f32 %v250_v1, %v262_v21 }
  0xd6   :  { %v266_v23 = vmul.f32 %v264_v22, %v264_v22 }
  0xd8   :  { %v268_v24 = vsel %vm254_vm1, %v266_v23, 0.0 }
  0xd9   :  { %269 = vadd.xlane.f32.xlu1 %v268_v24 }
  0xe0   :  { %v260_v25 = vpop.xlane.xlu0 %259 }
  0xe1   :  { %v263_v26 = vmul.f32 0.03125, %v260_v25 }
  0xe3   :  { %v265_v27 = vsub.f32 %v251_v18, %v263_v26  ;;  %v3119_v18 = vrot.slane %v319_v13, %v3082_v52 }
  0xe5   :  { %v267_v28 = vmul.f32 %v265_v27, %v265_v27 }
  0xe7   :  { %v271_v29 = vsel %vm254_vm1, %v267_v28, 0.0 }
  0xe8   :  { %272 = vadd.xlane.f32.xlu1 %v271_v29 }
 0x166   :  { %v270_v33 = vpop.xlane.xlu1 %269 }
 0x167   :  { %v274_v34 = vmul.f32 0.03125, %v270_v33 }
 0x169   :  { %v276_v35 = vadd.f32 1e-12, %v274_v34 }
 0x16b   :  { %2649 = vrsqrt.f32 %v276_v35 }
 0x175   :  { %v273_v36 = vpop.xlane.xlu1 %272  ;;  %v2650_v39 = vpop.eup %2649 }
 0x176   :  { %v275_v37 = vmul.f32 0.03125, %v273_v36  ;;  %v280_v40 = vmul.f32 %v2650_v39, %v264_v22 }
 0x178   :  { %v277_v38 = vadd.f32 1e-12, %v275_v37  ;;  %v286_v44 = vmul.f32 %v2284_v41, %v280_v40 }
 0x17a   :  { %2651 = vrsqrt.f32 %v277_v38  ;;  %v3070_v47 = vadd.f32 %v2285_v45, %v286_v44 }
 0x184   :  { %v2652_v42 = vpop.eup %2651 }
 0x185   :  { %v281_v43 = vmul.f32 %v2652_v42, %v265_v27 }
 0x187   :  { %v287_v46 = vmul.f32 %v2284_v41, %v281_v43 }
 0x189   :  { %v3072_v48 = vadd.f32 %v2285_v45, %v287_v46 }
 0x18b   :  { %v325_v49 = vpack.c.bf16 %v3072_v48, %v3070_v47 }
 0x18d   :  { %2434 = vmatmul.mubr.msk.bf16.vlgmr.msra.gmra.mrb[0].mxu0 %vm254_vm1, %v325_v49 }
 0x18e   :  { %2445 = vmatprep.mubr.msk.bf16.mxu0 %vm2766_vm2, %v2765_v31 }
 0x260   :  { %v379_v55 = vpop.f32.mrb[0].mxu0 }
 0x261   :  { %v380_v56 = vadd.f32 %v379_v55, %v329_v54  ;;  %v2435_v57 = vpop.f32.mrb[1].mxu0 }
 0x262   :  { %v382_v58 = vpop.f32.mrb[2].mxu0 }
 0x263   :  { %v3091_v59 = vpack.c.bf16 %v380_v56, %v380_v56  ;;  %v383_v60 = vadd.f32 %v382_v58, %v329_v54  ;;  %v2436_v61 = vpop.f32.mrb[3].mxu0 }
 0x265   :  { %v3093_v62 = vpack.c.bf16 %v383_v60, %v383_v60  ;;  %389 = vrot.lane.b32.xlu0 %v3091_v59, %s2767_s26 }
 0x267   :  { %439 = vrot.lane.b32.xlu1 %v3093_v62, %s2767_s26 }
 0x2d7   :  { %v390_v63 = vpop.permute.xlu0 %389 }
 0x2d8   :  { %v396_v0 = vsel %vm391_vm3, %v390_v63, 0 }
 0x2d9   :  { %2438 = vmatpush3.bf16.xpose.msra.mxu1 %v396_v0  ;;  %v440_v1 = vpop.permute.xlu1 %439 }
 0x2da   :  { %v445_v2 = vsel %vm391_vm3, %v440_v1, 0  ;;  %2449 = vmatprep.subr.bf16.mxu1 %v2765_v31 }
 0x2db   :  { %2444 = vmatpush3.bf16.xpose.msra.mxu0 %v445_v2 }
 0x2dc   :  { %2455 = vmatprep.subr.bf16.mxu0 %v2765_v31 }
 0x2e0   :  { %2440 = vmatmul.mubr.msk.bf16.vlgmr.msra.gmra.mrb[0].mxu1 %vm391_vm3, %v3091_v59 }
 0x2e1   :  { %2451 = vmatprep.mubr.msk.bf16.mxu1 %vm2766_vm2, %v2765_v31 }
 0x2e2   :  { %2446 = vmatmul.mubr.msk.bf16.vlgmr.msra.gmra.mrb[4].mxu0 %vm391_vm3, %v3093_v62 }
 0x2e3   :  { %2457 = vmatprep.mubr.msk.bf16.mxu0 %vm2766_vm2, %v2765_v31 }
 0x3b3   :  { %v432_v15 = vpop.f32.mrb[0].mxu1 }
 0x3b4   :  { %v487_v16 = vmul.f32 0.25, %v432_v15  ;;  %v2441_v17 = vpop.f32.mrb[1].mxu1 }
 0x3b5   :  { %v435_v19 = vpop.f32.mrb[2].mxu1  ;;  %v481_v20 = vpop.f32.mrb[4].mxu0 }
 0x3b6   :  { %v488_v21 = vmul.f32 0.25, %v481_v20  ;;  %v2442_v22 = vpop.f32.mrb[3].mxu1  ;;  %v2447_v23 = vpop.f32.mrb[5].mxu0  ;;  %v499_v24 = vadd.f32 %v3116_v14, %v487_v16 }
 0x3b7   :  { %v484_v25 = vpop.f32.mrb[6].mxu0 }
 0x3b8   :  { %v2448_v26 = vpop.f32.mrb[7].mxu0  ;;  %v502_v27 = vsel %vm501_vm4, %v499_v24, -inf  ;;  %v500_v28 = vadd.f32 %v3119_v18, %v488_v21 }
 0x3b9   :  { %503 = vmax.xlane.f32.xlu1 %v502_v27 }
 0x3ba   :  { %v505_v29 = vsel %vm501_vm4, %v500_v28, -inf }
 0x3bb   :  { %506 = vmax.xlane.f32.xlu0 %v505_v29 }
 0x3ca   :  { %575 = vrot.lane.b32.xlu1 %v3093_v62, %s2769_s2 }
 0x3ce   :  { %627 = vrot.lane.b32.xlu1 %v3091_v59, %s2770_s22 }
 0x446   :  { %v504_v30 = vpop.xlane.xlu1 %503 }
 0x447   :  { %v508_v32 = vsub.f32 %v499_v24, %v504_v30 }
 0x448   :  { %v507_v33 = vpop.xlane.xlu0 %506 }
 0x449   :  { %v510_v34 = vmul.f32 1.442695, %v508_v32  ;;  %v509_v35 = vsub.f32 %v500_v28, %v507_v33 }
 0x44a   :  { %v576_v36 = vpop.permute.xlu1 %575 }
 0x44b   :  { %2653 = vpow2.f32 %v510_v34  ;;  %v512_v37 = vmul.f32 1.442695, %v509_v35  ;;  %v581_v38 = vsel %vm531_vm5, %v576_v36, 0 }
 0x44c   :  { %2456 = vmatpush3.bf16.msra.mxu0 %v581_v38 }
 0x44d   :  { %2655 = vpow2.f32 %v512_v37  ;;  %2467 = vmatprep.subr.bf16.mxu0 %v2765_v31 }
 0x44e   :  { %v628_v43 = vpop.permute.xlu1 %627 }
 0x44f   :  { %v633_v60 = vsel %vm391_vm3, %v628_v43, 0 }
 0x455   :  { %v2654_v39 = vpop.eup %2653 }
 0x456   :  { %v514_v40 = vsel %vm501_vm4, %v2654_v39, 0.0 }
 0x457   :  { %v2656_v41 = vpop.eup %2655  ;;  %515 = vadd.xlane.f32.xlu0 %v514_v40 }
 0x458   :  { %v517_v42 = vsel %vm501_vm4, %v2656_v41, 0.0 }
 0x459   :  { %518 = vadd.xlane.f32.xlu1 %v517_v42 }
 0x46a   :  { %677 = vrot.lane.b32.xlu1 %v3093_v62, %s2770_s22 }
 0x46d   :  { %526 = vrot.lane.b32.xlu0 %v3091_v59, %s2769_s2 }
 0x46e   :  { %675 = vrot.lane.b32.xlu1 %v3093_v62, %s2771_s15 }
 0x471   :  { %625 = vrot.lane.b32.xlu0 %v3091_v59, %s2771_s15 }
 0x4e4   :  { %v516_v44 = vpop.xlane.xlu0 %515 }
 0x4e5   :  { %2657 = vrcp.f32 %v516_v44 }
 0x4e6   :  { %v519_v45 = vpop.xlane.xlu1 %518 }
 0x4e7   :  { %2659 = vrcp.f32 %v519_v45 }
 0x4e8   :  { %v527_v46 = vpop.permute.xlu0 %526 }
 0x4e9   :  { %v533_v49 = vsel %vm531_vm5, %v527_v46, 0 }
 0x4ea   :  { %2450 = vmatpush3.bf16.msra.mxu1 %v533_v49  ;;  %v678_v58 = vpop.permute.xlu1 %677  ;;  %v2627_v49 = vld [vmem:[%s3485_s7] sm:$0xff]  }
 0x4eb   :  { %2461 = vmatprep.subr.bf16.mxu1 %v2765_v31  ;;  %v683_v63 = vsel %vm391_vm3, %v678_v58, 0 }
 0x4ec   :  { %v626_v0 = vpop.permute.xlu0 %625 }
 0x4ee   :  { %v676_v1 = vpop.permute.xlu1 %675 }
 0x4ef   :  { %v2658_v50 = vpop.eup %2657 }
 0x4f0   :  { %v522_v54 = vmul.f32 %v2658_v50, %v2654_v39  ;;  %v2628_v50 = vld [vmem:[%s3485_s7 + $0x8] sm:$0xff]  }
 0x4f1   :  { %v2660_v55 = vpop.eup %2659 }
 0x4f2   :  { %v523_v56 = vmul.f32 %v2660_v55, %v2656_v41  ;;  %v524_v57 = vpack.c.bf16 %v522_v54, %v522_v54 }
 0x4f4   :  { %2452 = vmatmul.mubr.msk.bf16.vlgmr.msra.gmra.mrb[4].mxu1 %vm501_vm4, %v524_v57  ;;  %v525_v61 = vpack.c.bf16 %v523_v56, %v523_v56 }
 0x4f5   :  { %2462 = vmatpush3.bf16.xpose.msra.mxu1 %v633_v60  ;;  %2463 = vmatprep.mubr.msk.bf16.mxu1 %vm2766_vm2, %v2765_v31 }
 0x4f6   :  { %2458 = vmatmul.mubr.msk.bf16.vlgmr.msra.gmra.mrb[8].mxu0 %vm501_vm4, %v525_v61  ;;  %2473 = vmatprep.subr.bf16.mxu1 %v2765_v31 }
 0x4f7   :  { %2468 = vmatpush3.bf16.xpose.msra.mxu0 %v683_v63  ;;  %2469 = vmatprep.mubr.msk.bf16.mxu0 %vm2766_vm2, %v2765_v31 }
 0x4f8   :  { %2479 = vmatprep.subr.bf16.mxu0 %v2765_v31 }
 0x4fc   :  { %2464 = vmatmul.mubr.msk.bf16.vlgmr.msra.gmra.mrb[8].mxu1 %vm391_vm3, %v626_v0 }
 0x4fd   :  { %2475 = vmatprep.mubr.msk.bf16.mxu1 %vm2766_vm2, %v2765_v31 }
 0x4fe   :  { %2470 = vmatmul.mubr.msk.bf16.vlgmr.msra.gmra.mrb[12].mxu0 %vm391_vm3, %v676_v1 }
 0x4ff   :  { %2481 = vmatprep.mubr.msk.bf16.mxu0 %vm2766_vm2, %v2765_v31 }
 0x5c7   :  { %v569_v2 = vpop.f32.mrb[4].mxu1 }
 0x5c8   :  { %623 = vst.msk [vmem:[#allocation3] sm:$0xff] %vm391_vm3, %v569_v2  ;;  %v2453_v3 = vpop.f32.mrb[5].mxu1 }
 0x5c9   :  { %v572_v4 = vpop.f32.mrb[6].mxu1  ;;  %v617_v5 = vpop.f32.mrb[8].mxu0 }
 0x5ca   :  { %624 = vst.msk [vmem:[#allocation3 + $0x8] sm:$0xff] %vm391_vm3, %v617_v5  ;;  %v2454_v6 = vpop.f32.mrb[7].mxu1  ;;  %v2459_v7 = vpop.f32.mrb[9].mxu0  ;;  %v869_v5 = vsub.s32 2, %v3079_v51 }
 0x5cb   :  { %v620_v8 = vpop.f32.mrb[10].mxu0 }
 0x5cc   :  { %v2460_v9 = vpop.f32.mrb[11].mxu0  ;;  %v870_v6 = vrot.slane %v3087_v53, %v869_v5 }
 0x5cf   :  { %v669_v10 = vpop.f32.mrb[8].mxu1 }
 0x5d0   :  { %v725_v11 = vmul.f32 0.25, %v669_v10  ;;  %v2465_v12 = vpop.f32.mrb[9].mxu1 }
 0x5d1   :  { %v672_v13 = vpop.f32.mrb[10].mxu1  ;;  %v719_v15 = vpop.f32.mrb[12].mxu0 }
 0x5d2   :  { %v726_v16 = vmul.f32 0.25, %v719_v15  ;;  %v2466_v17 = vpop.f32.mrb[11].mxu1  ;;  %v2471_v19 = vpop.f32.mrb[13].mxu0  ;;  %v727_v20 = vadd.f32 %v725_v11, %v3116_v14 }
 0x5d3   :  { %v722_v21 = vpop.f32.mrb[14].mxu0 }
 0x5d4   :  { %v2472_v22 = vpop.f32.mrb[15].mxu0  ;;  %v729_v23 = vsel %vm501_vm4, %v727_v20, -inf  ;;  %v728_v24 = vadd.f32 %v726_v16, %v3119_v18 }
 0x5d5   :  { %730 = vmax.xlane.f32.xlu0 %v729_v23 }
 0x5d6   :  { %v732_v25 = vsel %vm501_vm4, %v728_v24, -inf }
 0x5d7   :  { %733 = vmax.xlane.f32.xlu1 %v732_v25 }
 0x5e8   :  { %801 = vrot.lane.b32.xlu1 %v3093_v62, %s2772_s13 }
 0x662   :  { %v731_v26 = vpop.xlane.xlu0 %730 }
 0x663   :  { %v735_v27 = vsub.f32 %v727_v20, %v731_v26 }
 0x664   :  { %v734_v28 = vpop.xlane.xlu1 %733 }
 0x665   :  { %v737_v29 = vmul.f32 1.442695, %v735_v27  ;;  %v736_v30 = vsub.f32 %v728_v24, %v734_v28  ;;  %v2630_v28 = vld [vmem:[%s3486_s8 + $0x8] sm:$0xff]  }
 0x667   :  { %2661 = vpow2.f32 %v737_v29  ;;  %v739_v32 = vmul.f32 1.442695, %v736_v30 }
 0x668   :  { %v802_v33 = vpop.permute.xlu1 %801 }
 0x669   :  { %2663 = vpow2.f32 %v739_v32  ;;  %v807_v34 = vsel %vm531_vm5, %v802_v33, 0 }
 0x66a   :  { %2480 = vmatpush3.bf16.msra.mxu0 %v807_v34 }
 0x66b   :  { %2493 = vmatprep.subr.bf16.mxu0 %v2765_v31 }
 0x671   :  { %v2662_v35 = vpop.eup %2661 }
 0x672   :  { %v741_v36 = vsel %vm501_vm4, %v2662_v35, 0.0 }
 0x673   :  { %v2664_v37 = vpop.eup %2663  ;;  %742 = vadd.xlane.f32.xlu0 %v741_v36  ;;  %v957_v36 = vsub.s32 3, %v3079_v51 }
 0x674   :  { %v744_v62 = vsel %vm501_vm4, %v2664_v37, 0.0 }
 0x677   :  { %745 = vadd.xlane.f32.xlu0 %v744_v62  ;;  %v958_v62 = vrot.slane %v3087_v53, %v957_v36 }
 0x68d   :  { %753 = vrot.lane.b32.xlu0 %v3091_v59, %s2772_s13 }
 0x700   :  { %v743_v38 = vpop.xlane.xlu0 %742 }
 0x701   :  { %2665 = vrcp.f32 %v743_v38 }
 0x704   :  { %v746_v39 = vpop.xlane.xlu0 %745 }
 0x705   :  { %2667 = vrcp.f32 %v746_v39  ;;  %v963_v39 = vsub.s32 4, %v3079_v51 }
 0x708   :  { %v754_v40 = vpop.permute.xlu0 %753 }
 0x709   :  { %v759_v41 = vsel %vm531_vm5, %v754_v40, 0 }
 0x70a   :  { %2474 = vmatpush3.bf16.msra.mxu1 %v759_v41 }
 0x70b   :  { %v2666_v42 = vpop.eup %2665  ;;  %2485 = vmatprep.subr.bf16.mxu1 %v2765_v31 }
 0x70c   :  { %v749_v43 = vmul.f32 %v2666_v42, %v2662_v35 }
 0x70e   :  { %v751_v44 = vpack.c.bf16 %v749_v43, %v749_v43  ;;  %v964_v43 = vrot.slane %v3087_v53, %v963_v39 }
 0x70f   :  { %v2668_v45 = vpop.eup %2667 }
 0x710   :  { %v750_v46 = vmul.f32 %v2668_v45, %v2664_v37  ;;  %2476 = vmatmul.mubr.msk.bf16.vlgmr.msra.gmra.mrb[12].mxu1 %vm501_vm4, %v751_v44 }
 0x711   :  { %2489 = vmatprep.mubr.msk.bf16.mxu1 %vm2766_vm2, %v2765_v31  ;;  %2486 = vmatpush3.bf16.msra.mxu1 %v2627_v49  ;;  %v2631_v49 = vld [vmem:[%s3496_s18] sm:$0xff]  }
 0x712   :  { %v752_v59 = vpack.c.bf16 %v750_v46, %v750_v46  ;;  %2487 = vmatprep.subr.bf16.mxu1 %v2765_v31 }
 0x714   :  { %2482 = vmatmul.mubr.msk.bf16.vlgmr.msra.gmra.mrb[16].mxu0 %vm501_vm4, %v752_v59 }
 0x715   :  { %2497 = vmatprep.mubr.msk.bf16.mxu0 %vm2766_vm2, %v2765_v31  ;;  %2488 = vmatpush3.bf16.msra.mxu1 %v2628_v50  ;;  %v2632_v50 = vld [vmem:[%s3496_s18 + $0x8] sm:$0xff]  }
 0x716   :  { %2501 = vmatprep.subr.bf16.mxu1 %v2765_v31 }
 0x7e3   :  { %v795_v54 = vpop.f32.mrb[12].mxu1 }
 0x7e4   :  { %851 = vrot.lane.b32.xlu1 %v795_v54, %s2773_s1  ;;  %v2477_v55 = vpop.f32.mrb[13].mxu1  ;;  %v2633_v54 = vld [vmem:[%s3496_s18 + $0x10] sm:$0xff]  }
 0x7e5   :  { %v798_v56 = vpop.f32.mrb[14].mxu1  ;;  %v2634_v55 = vld [vmem:[%s3496_s18 + $0x18] sm:$0xff]  }
 0x7e6   :  { %v2478_v57 = vpop.f32.mrb[15].mxu1  ;;  %v974_v56 = vsub.s32 1, %v3079_v51 }
 0x7e7   :  { %v843_v58 = vpop.f32.mrb[16].mxu0 }
 0x7e8   :  { %853 = vrot.lane.b32.xlu1 %v843_v58, %s2773_s1  ;;  %v2483_v60 = vpop.f32.mrb[17].mxu0  ;;  %v975_v57 = vrot.slane %v3087_v53, %v974_v56 }
 0x7e9   :  { %v846_v61 = vpop.f32.mrb[18].mxu0 }
 0x7ea   :  { %v2484_v63 = vpop.f32.mrb[19].mxu0 }
 0x856   :  { %v852_v0 = vpop.permute.xlu1 %851 }
 0x857   :  { %858 = vst.msk [vmem:[#allocation3] sm:$0xff] %vm857_vm6, %v852_v0 }
 0x85a   :  { %v854_v1 = vpop.permute.xlu1 %853 }
 0x85b   :  { %859 = vst.msk [vmem:[#allocation3 + $0x8] sm:$0xff] %vm857_vm6, %v854_v1 }
 0x85e   :  { %v860_v2 = vld [vmem:[#allocation3] sm:$0xff] }
 0x862   :  { %v861_v3 = vld [vmem:[#allocation3 + $0x8] sm:$0xff] }
 0x863   :  { %v866_v4 = vpack.c.bf16 %v861_v3, %v860_v2 }
 0x865   :  { %2490 = vmatmul.mubr.msk.bf16.vlgmr.msra.gmra.mrb[16].mxu1 %vm254_vm1, %v866_v4 }
 0x866   :  { %2509 = vmatprep.mubr.msk.bf16.mxu1 %vm2766_vm2, %v2765_v31  ;;  %2502 = vmatpush3.bf16.msra.mxu1 %v2631_v49 }
 0x867   :  { %2503 = vmatprep.subr.bf16.mxu1 %v2765_v31 }
 0x86a   :  { %2504 = vmatpush3.bf16.msra.mxu1 %v2632_v50 }
 0x86b   :  { %2505 = vmatprep.subr.bf16.mxu1 %v2765_v31 }
 0x86e   :  { %2506 = vmatpush3.bf16.msra.mxu1 %v2633_v54 }
 0x86f   :  { %2507 = vmatprep.subr.bf16.mxu1 %v2765_v31 }
 0x872   :  { %2508 = vmatpush3.bf16.msra.mxu1 %v2634_v55 }
 0x873   :  { %2527 = vmatprep.subr.bf16.mxu1 %v2765_v31 }
 0x938   :  { %v920_v7 = vpop.f32.mrb[16].mxu1 }
 0x939   :  { %v921_v8 = vadd.f32 %v920_v7, %v870_v6  ;;  %v2491_v9 = vpop.f32.mrb[17].mxu1 }
 0x93a   :  { %v923_v10 = vpop.f32.mrb[18].mxu1 }
 0x93b   :  { %v924_v11 = vadd.f32 %v923_v10, %v870_v6  ;;  %v2492_v12 = vpop.f32.mrb[19].mxu1  ;;  %v927_v13 = vadd.f32 %v921_v8, %v3070_v47 }
 0x93d   :  { %v929_v15 = vsel %vm254_vm1, %v927_v13, 0.0  ;;  %v928_v16 = vadd.f32 %v924_v11, %v3072_v48  ;;  %v2629_v48 = vld [vmem:[%s3486_s8] sm:$0xff]  }
 0x93e   :  { %930 = vadd.xlane.f32.xlu0 %v929_v15  ;;  %2494 = vmatpush3.bf16.msra.mxu0 %v2629_v48 }
 0x93f   :  { %v932_v17 = vsel %vm254_vm1, %v928_v16, 0.0  ;;  %2495 = vmatprep.subr.bf16.mxu0 %v2765_v31 }
 0x940   :  { %933 = vadd.xlane.f32.xlu1 %v932_v17 }
 0x942   :  { %2496 = vmatpush3.bf16.msra.mxu0 %v2630_v28 }
 0x943   :  { %2513 = vmatprep.subr.bf16.mxu0 %v2765_v31 }
 0x9cb   :  { %v931_v19 = vpop.xlane.xlu0 %930 }
 0x9cc   :  { %v935_v20 = vmul.f32 0.03125, %v931_v19 }
 0x9cd   :  { %v934_v21 = vpop.xlane.xlu1 %933 }
 0x9ce   :  { %v937_v22 = vsub.f32 %v927_v13, %v935_v20  ;;  %v936_v23 = vmul.f32 0.03125, %v934_v21 }
 0x9d0   :  { %v938_v24 = vsub.f32 %v928_v16, %v936_v23  ;;  %v939_v25 = vmul.f32 %v937_v22, %v937_v22 }
 0x9d2   :  { %v941_v26 = vsel %vm254_vm1, %v939_v25, 0.0  ;;  %v940_v27 = vmul.f32 %v938_v24, %v938_v24 }
 0x9d3   :  { %942 = vadd.xlane.f32.xlu0 %v941_v26 }
 0x9d4   :  { %v944_v47 = vsel %vm254_vm1, %v940_v27, 0.0 }
 0x9d7   :  { %945 = vadd.xlane.f32.xlu0 %v944_v47 }
 0xa60   :  { %v943_v29 = vpop.xlane.xlu0 %942 }
 0xa61   :  { %v947_v30 = vmul.f32 0.03125, %v943_v29 }
 0xa63   :  { %v949_v32 = vadd.f32 1e-12, %v947_v30 }
 0xa64   :  { %v946_v33 = vpop.xlane.xlu0 %945 }
 0xa65   :  { %2669 = vrsqrt.f32 %v949_v32  ;;  %v948_v34 = vmul.f32 0.03125, %v946_v33 }
 0xa67   :  { %v950_v35 = vadd.f32 1e-12, %v948_v34 }
 0xa69   :  { %2671 = vrsqrt.f32 %v950_v35 }
 0xa6f   :  { %v2670_v37 = vpop.eup %2669 }
 0xa70   :  { %v953_v38 = vmul.f32 %v2670_v37, %v937_v22 }
 0xa72   :  { %v959_v41 = vmul.f32 %v958_v62, %v953_v38 }
 0xa73   :  { %v2672_v40 = vpop.eup %2671 }
 0xa74   :  { %v954_v42 = vmul.f32 %v2672_v40, %v938_v24  ;;  %v965_v45 = vadd.f32 %v964_v43, %v959_v41  ;;  %v1061_v24 = vsub.s32 5, %v3079_v51 }
 0xa76   :  { %v960_v44 = vmul.f32 %v958_v62, %v954_v42  ;;  %v1062_v25 = vrot.slane %v3087_v53, %v1061_v24 }
 0xa78   :  { %v966_v46 = vadd.f32 %v964_v43, %v960_v44 }
 0xa7a   :  { %v971_v59 = vpack.c.bf16 %v966_v46, %v965_v45 }
 0xa7c   :  { %2498 = vmatmul.mubr.msk.bf16.vlgmr.msra.gmra.mrb[20].mxu0 %vm254_vm1, %v971_v59  ;;  %v2636_v59 = vld [vmem:[%s3484_s6 + $0x18] sm:$0xff]  }
 0xa7d   :  { %2517 = vmatprep.mubr.msk.bf16.mxu0 %vm2766_vm2, %v2765_v31 }
 0xb4f   :  { %v1025_v58 = vpop.f32.mrb[20].mxu0 }
 0xb50   :  { %v1026_v60 = vadd.f32 %v1025_v58, %v975_v57  ;;  %v2499_v61 = vpop.f32.mrb[21].mxu0 }
 0xb51   :  { %v1028_v63 = vpop.f32.mrb[22].mxu0 }
 0xb52   :  { %v1034_v0 = vmul.f32 0.044715, %v1026_v60  ;;  %v1029_v1 = vadd.f32 %v1028_v63, %v975_v57  ;;  %v2500_v2 = vpop.f32.mrb[23].mxu0  ;;  %v1032_v17 = vmul.f32 0.5, %v1026_v60  ;;  %v1168_v63 = vsub.s32 7, %v3079_v51 }
 0xb54   :  { %v1036_v3 = vmul.f32 %v1034_v0, %v1026_v60  ;;  %v1035_v4 = vmul.f32 0.044715, %v1029_v1  ;;  %v1033_v19 = vmul.f32 0.5, %v1029_v1 }
 0xb56   :  { %v1038_v6 = vmul.f32 %v1036_v3, %v1026_v60  ;;  %v1037_v7 = vmul.f32 %v1035_v4, %v1029_v1 }
 0xb58   :  { %v1040_v8 = vadd.f32 %v1038_v6, %v1026_v60  ;;  %v1039_v9 = vmul.f32 %v1037_v7, %v1029_v1  ;;  %v1162_v60 = vsub.s32 6, %v3079_v51  ;;  %v1169_v6 = vrot.slane %v3087_v53, %v1168_v63  ;;  %v2647_v51 = vld [vmem:[%s3497_s25 + $0x10] sm:$0xff]  }
 0xb5a   :  { %v1042_v10 = vmul.f32 0.7978846, %v1040_v8  ;;  %v1041_v11 = vadd.f32 %v1039_v9, %v1029_v1  ;;  %v1163_v61 = vrot.slane %v3087_v53, %v1162_v60 }
 0xb5c   :  { %2673 = vtanh.f32 %v1042_v10  ;;  %v1043_v12 = vmul.f32 0.7978846, %v1041_v11  ;;  %v3284_v11 = vld [vmem:[%s3483_s5 + $0x8] sm:$0xff]  ;;  %s2164_s5 = sshll.u32 %s2774_s27, 4  ;;  %s2165_s5 = int_to_ptr.vmem [resolvable:$true] %s2164_s5 }
 0xb5d   :  { %v1183_v53 = vrot.slane %v3284_v11, %v3082_v52  ;;  %p2740_p11 = scmp.lt.s32.totalorder %s2165_s5, %s2165_s5 }
 0xb5e   :  { %2675 = vtanh.f32 %v1043_v12 }
 0xb66   :  { %v2674_v13 = vpop.eup %2673 }
 0xb67   :  { %v1046_v15 = vadd.f32 1.0, %v2674_v13 }
 0xb68   :  { %v2676_v16 = vpop.eup %2675 }
 0xb69   :  { %v1047_v20 = vadd.f32 1.0, %v2676_v16  ;;  %v1048_v21 = vmul.f32 %v1046_v15, %v1032_v17 }
 0xb6b   :  { %v1049_v22 = vmul.f32 %v1047_v20, %v1033_v19 }
 0xb6d   :  { %v1058_v23 = vpack.c.bf16 %v1049_v22, %v1048_v21 }
 0xb6f   :  { %2510 = vmatmul.mubr.msk.bf16.vlgmr.msra.gmra.mrb[20].mxu1 %vm1087_vm7, %v1058_v23 }
 0xb70   :  { %2529 = vmatprep.mubr.msk.bf16.mxu1 %vm2766_vm2, %v2765_v31 }
 0xc42   :  { %v1125_v26 = vpop.f32.mrb[20].mxu1 }
 0xc43   :  { %v1126_v27 = vadd.f32 %v1125_v26, %v1062_v25  ;;  %v2511_v47 = vpop.f32.mrb[21].mxu1 }
 0xc44   :  { %v1128_v48 = vpop.f32.mrb[22].mxu1 }
 0xc45   :  { %v1129_v28 = vadd.f32 %v1128_v48, %v1062_v25  ;;  %v2512_v29 = vpop.f32.mrb[23].mxu1  ;;  %v1132_v30 = vadd.f32 %v1126_v27, %v965_v45 }
 0xc47   :  { %v1134_v32 = vsel %vm254_vm1, %v1132_v30, 0.0  ;;  %v1133_v33 = vadd.f32 %v1129_v28, %v966_v46  ;;  %v2635_v46 = vld [vmem:[%s3484_s6 + $0x10] sm:$0xff]  }
 0xc48   :  { %1135 = vadd.xlane.f32.xlu0 %v1134_v32  ;;  %2514 = vmatpush3.bf16.msra.mxu0 %v2635_v46 }
 0xc49   :  { %v1137_v34 = vsel %vm254_vm1, %v1133_v33, 0.0  ;;  %2515 = vmatprep.subr.bf16.mxu0 %v2765_v31 }
 0xc4a   :  { %1138 = vadd.xlane.f32.xlu1 %v1137_v34 }
 0xc4c   :  { %2516 = vmatpush3.bf16.msra.mxu0 %v2636_v59 }
 0xc4d   :  { %2521 = vmatprep.subr.bf16.mxu0 %v2765_v31 }
 0xcd5   :  { %v1136_v35 = vpop.xlane.xlu0 %1135 }
 0xcd6   :  { %v1140_v37 = vmul.f32 0.03125, %v1136_v35 }
 0xcd7   :  { %v1139_v62 = vpop.xlane.xlu1 %1138 }
 0xcd8   :  { %v1142_v38 = vsub.f32 %v1132_v30, %v1140_v37  ;;  %v1141_v40 = vmul.f32 0.03125, %v1139_v62 }
 0xcda   :  { %v1143_v41 = vsub.f32 %v1133_v33, %v1141_v40  ;;  %v1144_v42 = vmul.f32 %v1142_v38, %v1142_v38 }
 0xcdc   :  { %v1146_v43 = vsel %vm254_vm1, %v1144_v42, 0.0  ;;  %v1145_v44 = vmul.f32 %v1143_v41, %v1143_v41 }
 0xcdd   :  { %1147 = vadd.xlane.f32.xlu0 %v1146_v43 }
 0xcde   :  { %v1149_v45 = vsel %vm254_vm1, %v1145_v44, 0.0 }
 0xcdf   :  { %1150 = vadd.xlane.f32.xlu1 %v1149_v45 }
 0xd6a   :  { %v1148_v49 = vpop.xlane.xlu0 %1147 }
 0xd6b   :  { %v1152_v50 = vmul.f32 0.03125, %v1148_v49 }
 0xd6c   :  { %v1151_v54 = vpop.xlane.xlu1 %1150 }
 0xd6d   :  { %v1154_v55 = vadd.f32 1e-12, %v1152_v50  ;;  %v1153_v57 = vmul.f32 0.03125, %v1151_v54 }
 0xd6f   :  { %2677 = vrsqrt.f32 %v1154_v55  ;;  %v1155_v58 = vadd.f32 1e-12, %v1153_v57 }
 0xd71   :  { %2679 = vrsqrt.f32 %v1155_v58 }
 0xd79   :  { %v2678_v0 = vpop.eup %2677 }
 0xd7a   :  { %v1158_v1 = vmul.f32 %v2678_v0, %v1142_v38 }
 0xd7b   :  { %v2680_v2 = vpop.eup %2679 }
 0xd7c   :  { %v1164_v3 = vmul.f32 %v1163_v61, %v1158_v1  ;;  %v1159_v4 = vmul.f32 %v2680_v2, %v1143_v41 }
 0xd7e   :  { %v1165_v7 = vmul.f32 %v1163_v61, %v1159_v4  ;;  %v3272_v8 = vadd.f32 %v1169_v6, %v1164_v3 }
 0xd80   :  { %v3274_v9 = vadd.f32 %v1169_v6, %v1165_v7 }
 0xd82   :  { %v1179_v10 = vpack.c.bf16 %v3274_v9, %v3272_v8 }
 0xd84   :  { %2518 = vmatmul.mubr.msk.bf16.vlgmr.msra.gmra.mrb[24].mxu0 %vm254_vm1, %v1179_v10 }
 0xd85   :  { %2523 = vmatprep.mubr.msk.bf16.mxu0 %vm2766_vm2, %v2765_v31 }
 0xe57   :  { %v1233_v12 = vpop.f32.mrb[24].mxu0 }
 0xe58   :  { %v1234_v13 = vadd.f32 %v1233_v12, %v1183_v53  ;;  %v2519_v15 = vpop.f32.mrb[25].mxu0 }
 0xe59   :  { %v1236_v16 = vpop.f32.mrb[26].mxu0 }
 0xe5a   :  { %v3288_v17 = vpack.c.bf16 %v1234_v13, %v1234_v13  ;;  %v1237_v19 = vadd.f32 %v1236_v16, %v1183_v53  ;;  %v2520_v20 = vpop.f32.mrb[27].mxu0 }
 0xe5c   :  { %v3290_v21 = vpack.c.bf16 %v1237_v19, %v1237_v19  ;;  %1243 = vrot.lane.b32.xlu0 %v3288_v17, %s2767_s26 }
 0xe5e   :  { %1292 = vrot.lane.b32.xlu1 %v3290_v21, %s2767_s26  ;;  %s2735_s26 = scalar_lea.vmem %s2165_s5, 32 }
 0xe5f   :  { %p2736_p10 = scmp.ne.s32.totalorder %s2165_s5, %s2735_s26  ;;  %p2741_p12 = scmp.lt.s32.totalorder %s2735_s26, %s2735_s26 }
 0xe61   :  { %p2742_p13 = por %p2741_p12, %p2740_p11 }
 0xe63   :  { %p2743_p0 = pnand %p2742_p13, %p2736_p10 }
 0xece   :  { %v1244_v22 = vpop.permute.xlu0 %1243 }
 0xecf   :  { %v1249_v23 = vsel %vm391_vm3, %v1244_v22, 0 }
 0xed0   :  { %2522 = vmatpush3.bf16.xpose.msra.mxu0 %v1249_v23  ;;  %v1293_v52 = vpop.permute.xlu1 %1292 }
 0xed1   :  { %v1298_v25 = vsel %vm391_vm3, %v1293_v52, 0  ;;  %2533 = vmatprep.subr.bf16.mxu0 %v2765_v31 }
 0xed2   :  { %2528 = vmatpush3.bf16.xpose.msra.mxu1 %v1298_v25 }
 0xed3   :  { %2539 = vmatprep.subr.bf16.mxu1 %v2765_v31 }
 0xed7   :  { %2524 = vmatmul.mubr.msk.bf16.vlgmr.msra.gmra.mrb[28].mxu0 %vm391_vm3, %v3288_v17 }
 0xed8   :  { %2535 = vmatprep.mubr.msk.bf16.mxu0 %vm2766_vm2, %v2765_v31 }
 0xed9   :  { %2530 = vmatmul.mubr.msk.bf16.vlgmr.msra.gmra.mrb[24].mxu1 %vm391_vm3, %v3290_v21 }
 0xeda   :  { %2541 = vmatprep.mubr.msk.bf16.mxu1 %vm2766_vm2, %v2765_v31 }
 0xfaa   :  { %v1285_v26 = vpop.f32.mrb[28].mxu0 }
 0xfab   :  { %v1340_v27 = vmul.f32 0.25, %v1285_v26  ;;  %v2525_v47 = vpop.f32.mrb[29].mxu0 }
 0xfac   :  { %v1288_v48 = vpop.f32.mrb[30].mxu0  ;;  %v1334_v28 = vpop.f32.mrb[24].mxu1 }
 0xfad   :  { %v1341_v29 = vmul.f32 0.25, %v1334_v28  ;;  %v2526_v30 = vpop.f32.mrb[31].mxu0  ;;  %v2531_v32 = vpop.f32.mrb[25].mxu1  ;;  %v1342_v33 = vadd.f32 %v1340_v27, %v3116_v14 }
 0xfae   :  { %v1337_v34 = vpop.f32.mrb[26].mxu1 }
 0xfaf   :  { %v2532_v35 = vpop.f32.mrb[27].mxu1  ;;  %v1344_v37 = vsel %vm501_vm4, %v1342_v33, -inf  ;;  %v1343_v62 = vadd.f32 %v1341_v29, %v3119_v18 }
 0xfb0   :  { %1345 = vmax.xlane.f32.xlu1 %v1344_v37 }
 0xfb1   :  { %v1347_v38 = vsel %vm501_vm4, %v1343_v62, -inf }
 0xfb2   :  { %1348 = vmax.xlane.f32.xlu0 %v1347_v38 }
 0xfc1   :  { %1416 = vrot.lane.b32.xlu1 %v3290_v21, %s2769_s2 }
 0xfc5   :  { %1468 = vrot.lane.b32.xlu1 %v3288_v17, %s2770_s22 }
0x103d   :  { %v1346_v40 = vpop.xlane.xlu1 %1345 }
0x103e   :  { %v1350_v41 = vsub.f32 %v1342_v33, %v1346_v40 }
0x103f   :  { %v1349_v42 = vpop.xlane.xlu0 %1348 }
0x1040   :  { %v1352_v43 = vmul.f32 1.442695, %v1350_v41  ;;  %v1351_v44 = vsub.f32 %v1343_v62, %v1349_v42 }
0x1041   :  { %v1417_v45 = vpop.permute.xlu1 %1416 }
0x1042   :  { %2681 = vpow2.f32 %v1352_v43  ;;  %v1354_v46 = vmul.f32 1.442695, %v1351_v44  ;;  %v1422_v59 = vsel %vm531_vm5, %v1417_v45, 0 }
0x1043   :  { %2540 = vmatpush3.bf16.msra.mxu1 %v1422_v59 }
0x1044   :  { %2683 = vpow2.f32 %v1354_v46  ;;  %2551 = vmatprep.subr.bf16.mxu1 %v2765_v31 }
0x1045   :  { %v1469_v57 = vpop.permute.xlu1 %1468 }
0x1046   :  { %v1474_v53 = vsel %vm391_vm3, %v1469_v57, 0 }
0x104c   :  { %v2682_v49 = vpop.eup %2681 }
0x104d   :  { %v1356_v50 = vsel %vm501_vm4, %v2682_v49, 0.0 }
0x104e   :  { %v2684_v54 = vpop.eup %2683  ;;  %1357 = vadd.xlane.f32.xlu0 %v1356_v50 }
0x104f   :  { %v1359_v55 = vsel %vm501_vm4, %v2684_v54, 0.0 }
0x1050   :  { %1360 = vadd.xlane.f32.xlu1 %v1359_v55 }
0x1061   :  { %1518 = vrot.lane.b32.xlu1 %v3290_v21, %s2770_s22 }
0x1064   :  { %1368 = vrot.lane.b32.xlu0 %v3288_v17, %s2769_s2 }
0x1065   :  { %1516 = vrot.lane.b32.xlu1 %v3290_v21, %s2771_s15 }
0x1068   :  { %1466 = vrot.lane.b32.xlu0 %v3288_v17, %s2771_s15 }
0x10db   :  { %v1358_v58 = vpop.xlane.xlu0 %1357 }
0x10dc   :  { %2685 = vrcp.f32 %v1358_v58 }
0x10dd   :  { %v1361_v61 = vpop.xlane.xlu1 %1360 }
0x10de   :  { %2687 = vrcp.f32 %v1361_v61 }
0x10df   :  { %v1369_v0 = vpop.permute.xlu0 %1368 }
0x10e0   :  { %v1374_v1 = vsel %vm531_vm5, %v1369_v0, 0 }
0x10e1   :  { %2534 = vmatpush3.bf16.msra.mxu0 %v1374_v1  ;;  %v1519_v10 = vpop.permute.xlu1 %1518 }
0x10e2   :  { %2545 = vmatprep.subr.bf16.mxu0 %v2765_v31  ;;  %v1524_v13 = vsel %vm391_vm3, %v1519_v10, 0 }
0x10e3   :  { %v1467_v15 = vpop.permute.xlu0 %1466 }
0x10e5   :  { %v1517_v16 = vpop.permute.xlu1 %1516 }
0x10e6   :  { %v2686_v2 = vpop.eup %2685 }
0x10e7   :  { %v1364_v3 = vmul.f32 %v2686_v2, %v2682_v49 }
0x10e8   :  { %v2688_v4 = vpop.eup %2687 }
0x10e9   :  { %v1365_v6 = vmul.f32 %v2688_v4, %v2684_v54  ;;  %v1366_v7 = vpack.c.bf16 %v1364_v3, %v1364_v3 }
0x10eb   :  { %2536 = vmatmul.mubr.msk.bf16.vlgmr.msra.gmra.mrb[32].mxu0 %vm501_vm4, %v1366_v7  ;;  %v1367_v12 = vpack.c.bf16 %v1365_v6, %v1365_v6  ;;  %v2637_v6 = vld [vmem:[%s3485_s7 + $0x10] sm:$0xff]   ;;  %v2638_v7 = vld [vmem:[%s3485_s7 + $0x18] sm:$0xff]  }
0x10ec   :  { %2546 = vmatpush3.bf16.xpose.msra.mxu0 %v1474_v53  ;;  %2547 = vmatprep.mubr.msk.bf16.mxu0 %vm2766_vm2, %v2765_v31 }
0x10ed   :  { %2542 = vmatmul.mubr.msk.bf16.vlgmr.msra.gmra.mrb[28].mxu1 %vm501_vm4, %v1367_v12  ;;  %2557 = vmatprep.subr.bf16.mxu0 %v2765_v31 }
0x10ee   :  { %2552 = vmatpush3.bf16.xpose.msra.mxu1 %v1524_v13  ;;  %2553 = vmatprep.mubr.msk.bf16.mxu1 %vm2766_vm2, %v2765_v31 }
0x10ef   :  { %2563 = vmatprep.subr.bf16.mxu1 %v2765_v31 }
0x10f3   :  { %2548 = vmatmul.mubr.msk.bf16.vlgmr.msra.gmra.mrb[36].mxu0 %vm391_vm3, %v1467_v15 }
0x10f4   :  { %2559 = vmatprep.mubr.msk.bf16.mxu0 %vm2766_vm2, %v2765_v31 }
0x10f5   :  { %2554 = vmatmul.mubr.msk.bf16.vlgmr.msra.gmra.mrb[32].mxu1 %vm391_vm3, %v1517_v16 }
0x10f6   :  { %2565 = vmatprep.mubr.msk.bf16.mxu1 %vm2766_vm2, %v2765_v31 }
0x11be   :  { %v1410_v19 = vpop.f32.mrb[32].mxu0 }
0x11bf   :  { %1464 = vst.msk [vmem:[#allocation3] sm:$0xff] %vm391_vm3, %v1410_v19  ;;  %v2537_v20 = vpop.f32.mrb[33].mxu0 }
0x11c0   :  { %v1413_v22 = vpop.f32.mrb[34].mxu0  ;;  %v1458_v23 = vpop.f32.mrb[28].mxu1 }
0x11c1   :  { %1465 = vst.msk [vmem:[#allocation3 + $0x8] sm:$0xff] %vm391_vm3, %v1458_v23  ;;  %v2538_v52 = vpop.f32.mrb[35].mxu0  ;;  %v2543_v25 = vpop.f32.mrb[29].mxu1 }
0x11c2   :  { %v1461_v26 = vpop.f32.mrb[30].mxu1 }
0x11c3   :  { %v2544_v27 = vpop.f32.mrb[31].mxu1 }
0x11c4   :  { %v1711_v27 = vrot.slane %v3284_v11, %v869_v5 }
0x11c6   :  { %v1510_v47 = vpop.f32.mrb[36].mxu0 }
0x11c7   :  { %v1566_v48 = vmul.f32 0.25, %v1510_v47  ;;  %v2549_v28 = vpop.f32.mrb[37].mxu0 }
0x11c8   :  { %v1513_v29 = vpop.f32.mrb[38].mxu0  ;;  %v1560_v30 = vpop.f32.mrb[32].mxu1 }
0x11c9   :  { %v1567_v32 = vmul.f32 0.25, %v1560_v30  ;;  %v2550_v33 = vpop.f32.mrb[39].mxu0  ;;  %v2555_v34 = vpop.f32.mrb[33].mxu1  ;;  %v1568_v35 = vadd.f32 %v1566_v48, %v3116_v14 }
0x11ca   :  { %v1563_v37 = vpop.f32.mrb[34].mxu1 }
0x11cb   :  { %v2556_v62 = vpop.f32.mrb[35].mxu1  ;;  %v1570_v38 = vsel %vm501_vm4, %v1568_v35, -inf  ;;  %v1569_v40 = vadd.f32 %v1567_v32, %v3119_v18 }
0x11cc   :  { %1571 = vmax.xlane.f32.xlu0 %v1570_v38 }
0x11cd   :  { %v1573_v41 = vsel %vm501_vm4, %v1569_v40, -inf }
0x11ce   :  { %1574 = vmax.xlane.f32.xlu1 %v1573_v41 }
0x11df   :  { %1642 = vrot.lane.b32.xlu1 %v3290_v21, %s2772_s13 }
0x1259   :  { %v1572_v42 = vpop.xlane.xlu0 %1571 }
0x125a   :  { %v1576_v43 = vsub.f32 %v1568_v35, %v1572_v42 }
0x125b   :  { %v1575_v44 = vpop.xlane.xlu1 %1574 }
0x125c   :  { %v1578_v45 = vmul.f32 1.442695, %v1576_v43  ;;  %v1577_v46 = vsub.f32 %v1569_v40, %v1575_v44 }
0x125e   :  { %2689 = vpow2.f32 %v1578_v45  ;;  %v1580_v14 = vmul.f32 1.442695, %v1577_v46  ;;  %v2640_v46 = vld [vmem:[%s3486_s8 + $0x18] sm:$0xff]  }
0x125f   :  { %v1643_v59 = vpop.permute.xlu1 %1642 }
0x1260   :  { %2691 = vpow2.f32 %v1580_v14  ;;  %v1648_v49 = vsel %vm531_vm5, %v1643_v59, 0 }
0x1261   :  { %2564 = vmatpush3.bf16.msra.mxu1 %v1648_v49 }
0x1262   :  { %2577 = vmatprep.subr.bf16.mxu1 %v2765_v31 }
0x1268   :  { %v2690_v18 = vpop.eup %2689 }
0x1269   :  { %v1582_v50 = vsel %vm501_vm4, %v2690_v18, 0.0 }
0x126a   :  { %v2692_v54 = vpop.eup %2691  ;;  %1583 = vadd.xlane.f32.xlu0 %v1582_v50 }
0x126b   :  { %v1585_v21 = vsel %vm501_vm4, %v2692_v54, 0.0 }
0x126e   :  { %1586 = vadd.xlane.f32.xlu0 %v1585_v21 }
0x1284   :  { %1594 = vrot.lane.b32.xlu0 %v3288_v17, %s2772_s13 }
0x12f7   :  { %v1584_v55 = vpop.xlane.xlu0 %1583 }
0x12f8   :  { %2693 = vrcp.f32 %v1584_v55  ;;  %v1799_v55 = vrot.slane %v3284_v11, %v957_v36  ;;  %v2641_v36 = vld [vmem:[%s3496_s18 + $0x20] sm:$0xff]  }
0x12fb   :  { %v1587_v57 = vpop.xlane.xlu0 %1586 }
0x12fc   :  { %2695 = vrcp.f32 %v1587_v57 }
0x12ff   :  { %v1595_v58 = vpop.permute.xlu0 %1594 }
0x1300   :  { %v1600_v61 = vsel %vm531_vm5, %v1595_v58, 0 }
0x1301   :  { %2558 = vmatpush3.bf16.msra.mxu0 %v1600_v61 }
0x1302   :  { %v2694_v0 = vpop.eup %2693  ;;  %2569 = vmatprep.subr.bf16.mxu0 %v2765_v31 }
0x1303   :  { %v1590_v1 = vmul.f32 %v2694_v0, %v2690_v18 }
0x1305   :  { %v1592_v2 = vpack.c.bf16 %v1590_v1, %v1590_v1  ;;  %v1805_v1 = vrot.slane %v3284_v11, %v963_v39  ;;  %v2643_v39 = vld [vmem:[%s3496_s18 + $0x30] sm:$0xff]  }
0x1306   :  { %v2696_v3 = vpop.eup %2695 }
0x1307   :  { %v1591_v4 = vmul.f32 %v2696_v3, %v2692_v54  ;;  %2560 = vmatmul.mubr.msk.bf16.vlgmr.msra.gmra.mrb[40].mxu0 %vm501_vm4, %v1592_v2 }
0x1308   :  { %2573 = vmatprep.mubr.msk.bf16.mxu0 %vm2766_vm2, %v2765_v31  ;;  %2570 = vmatpush3.bf16.msra.mxu0 %v2637_v6  ;;  %v2642_v6 = vld [vmem:[%s3496_s18 + $0x28] sm:$0xff]  }
0x1309   :  { %v1593_v17 = vpack.c.bf16 %v1591_v4, %v1591_v4  ;;  %2571 = vmatprep.subr.bf16.mxu0 %v2765_v31 }
0x130b   :  { %2566 = vmatmul.mubr.msk.bf16.vlgmr.msra.gmra.mrb[36].mxu1 %vm501_vm4, %v1593_v17 }
0x130c   :  { %2581 = vmatprep.mubr.msk.bf16.mxu1 %vm2766_vm2, %v2765_v31  ;;  %2572 = vmatpush3.bf16.msra.mxu0 %v2638_v7  ;;  %v2644_v7 = vld [vmem:[%s3496_s18 + $0x38] sm:$0xff]  }
0x130d   :  { %2585 = vmatprep.subr.bf16.mxu0 %v2765_v31 }
0x13da   :  { %v1636_v10 = vpop.f32.mrb[40].mxu0 }
0x13db   :  { %1692 = vrot.lane.b32.xlu1 %v1636_v10, %s2773_s1  ;;  %v2561_v53 = vpop.f32.mrb[41].mxu0  ;;  %v1817_v10 = vrot.slane %v3284_v11, %v974_v56 }
0x13dc   :  { %v1639_v12 = vpop.f32.mrb[42].mxu0 }
0x13dd   :  { %v2562_v13 = vpop.f32.mrb[43].mxu0 }
0x13de   :  { %v1684_v15 = vpop.f32.mrb[36].mxu1 }
0x13df   :  { %v2567_v16 = vpop.f32.mrb[37].mxu1  ;;  %1694 = vrot.lane.b32.xlu1 %v1684_v15, %s2773_s1 }
0x13e0   :  { %v1687_v19 = vpop.f32.mrb[38].mxu1 }
0x13e1   :  { %v2568_v20 = vpop.f32.mrb[39].mxu1 }
0x144d   :  { %v1693_v22 = vpop.permute.xlu1 %1692 }
0x144e   :  { %1698 = vst.msk [vmem:[#allocation3] sm:$0xff] %vm857_vm6, %v1693_v22 }
0x1451   :  { %v1695_v23 = vpop.permute.xlu1 %1694 }
0x1452   :  { %1699 = vst.msk [vmem:[#allocation3 + $0x8] sm:$0xff] %vm857_vm6, %v1695_v23 }
0x1455   :  { %v1700_v52 = vld [vmem:[#allocation3] sm:$0xff] }
0x1459   :  { %v1701_v25 = vld [vmem:[#allocation3 + $0x8] sm:$0xff] }
0x145a   :  { %v1707_v26 = vpack.c.bf16 %v1701_v25, %v1700_v52 }
0x145c   :  { %2574 = vmatmul.mubr.msk.bf16.vlgmr.msra.gmra.mrb[44].mxu0 %vm254_vm1, %v1707_v26 }
0x145d   :  { %2593 = vmatprep.mubr.msk.bf16.mxu0 %vm2766_vm2, %v2765_v31  ;;  %2586 = vmatpush3.bf16.msra.mxu0 %v2641_v36  ;;  %v2005_v36 = vrot.slane %v3284_v11, %v1162_v60 }
0x145e   :  { %2587 = vmatprep.subr.bf16.mxu0 %v2765_v31 }
0x1461   :  { %2588 = vmatpush3.bf16.msra.mxu0 %v2642_v6 }
0x1462   :  { %2589 = vmatprep.subr.bf16.mxu0 %v2765_v31 }
0x1465   :  { %2590 = vmatpush3.bf16.msra.mxu0 %v2643_v39  ;;  %v2011_v39 = vrot.slane %v3284_v11, %v1168_v63  ;;  %v2648_v63 = vld [vmem:[%s3497_s25 + $0x18] sm:$0xff]  }
0x1466   :  { %2591 = vmatprep.subr.bf16.mxu0 %v2765_v31 }
0x1469   :  { %2592 = vmatpush3.bf16.msra.mxu0 %v2644_v7 }
0x152f   :  { %v1761_v47 = vpop.f32.mrb[44].mxu0 }
0x1530   :  { %v1762_v48 = vadd.f32 %v1761_v47, %v1711_v27  ;;  %v2575_v28 = vpop.f32.mrb[45].mxu0 }
0x1531   :  { %v1764_v29 = vpop.f32.mrb[46].mxu0 }
0x1532   :  { %v1765_v30 = vadd.f32 %v1764_v29, %v1711_v27  ;;  %v2576_v32 = vpop.f32.mrb[47].mxu0  ;;  %v1768_v33 = vadd.f32 %v1762_v48, %v3272_v8 }
0x1534   :  { %v1770_v34 = vsel %vm254_vm1, %v1768_v33, 0.0  ;;  %v1769_v35 = vadd.f32 %v1765_v30, %v3274_v9  ;;  %v2639_v9 = vld [vmem:[%s3486_s8 + $0x10] sm:$0xff]  }
0x1535   :  { %1771 = vadd.xlane.f32.xlu0 %v1770_v34  ;;  %2578 = vmatpush3.bf16.msra.mxu1 %v2639_v9 }
0x1536   :  { %v1773_v37 = vsel %vm254_vm1, %v1769_v35, 0.0  ;;  %2579 = vmatprep.subr.bf16.mxu1 %v2765_v31 }
0x1537   :  { %1774 = vadd.xlane.f32.xlu1 %v1773_v37 }
0x1539   :  { %2580 = vmatpush3.bf16.msra.mxu1 %v2640_v46 }
0x153a   :  { %2597 = vmatprep.subr.bf16.mxu1 %v2765_v31 }
0x15c2   :  { %v1772_v62 = vpop.xlane.xlu0 %1771 }
0x15c3   :  { %v1776_v38 = vmul.f32 0.03125, %v1772_v62 }
0x15c4   :  { %v1775_v40 = vpop.xlane.xlu1 %1774 }
0x15c5   :  { %v1778_v5 = vsub.f32 %v1768_v33, %v1776_v38  ;;  %v1777_v41 = vmul.f32 0.03125, %v1775_v40  ;;  %v1905_v38 = vrot.slane %v3284_v11, %v1061_v24  ;;  %v2351_v11 = vld [vmem:[%s3482_s4 + $0x2] ss:$0 sm:$0xff] }
0x15c7   :  { %v1779_v42 = vsub.f32 %v1769_v35, %v1777_v41  ;;  %v1780_v43 = vmul.f32 %v1778_v5, %v1778_v5 }
0x15c9   :  { %v1782_v44 = vsel %vm254_vm1, %v1780_v43, 0.0  ;;  %v1781_v45 = vmul.f32 %v1779_v42, %v1779_v42 }
0x15ca   :  { %1783 = vadd.xlane.f32.xlu0 %v1782_v44 }
0x15cb   :  { %v1785_v8 = vsel %vm254_vm1, %v1781_v45, 0.0 }
0x15ce   :  { %1786 = vadd.xlane.f32.xlu0 %v1785_v8 }
0x1657   :  { %v1784_v14 = vpop.xlane.xlu0 %1783 }
0x1658   :  { %v1788_v59 = vmul.f32 0.03125, %v1784_v14 }
0x165a   :  { %v1790_v49 = vadd.f32 1e-12, %v1788_v59 }
0x165b   :  { %v1787_v18 = vpop.xlane.xlu0 %1786 }
0x165c   :  { %2697 = vrsqrt.f32 %v1790_v49  ;;  %v1789_v50 = vmul.f32 0.03125, %v1787_v18 }
0x165e   :  { %v1791_v54 = vadd.f32 1e-12, %v1789_v50 }
0x1660   :  { %2699 = vrsqrt.f32 %v1791_v54 }
0x1666   :  { %v2698_v21 = vpop.eup %2697 }
0x1667   :  { %v1794_v57 = vmul.f32 %v2698_v21, %v1778_v5 }
0x1669   :  { %v1800_v61 = vmul.f32 %v1799_v55, %v1794_v57 }
0x166a   :  { %v2700_v58 = vpop.eup %2699 }
0x166b   :  { %v1795_v0 = vmul.f32 %v2700_v58, %v1779_v42  ;;  %v1806_v3 = vadd.f32 %v1805_v1, %v1800_v61  ;;  %v2645_v58 = vld [vmem:[%s3497_s25] sm:$0xff]   ;;  %v2646_v61 = vld [vmem:[%s3497_s25 + $0x8] sm:$0xff]  }
0x166d   :  { %v1801_v2 = vmul.f32 %v1799_v55, %v1795_v0 }
0x166f   :  { %v1807_v4 = vadd.f32 %v1805_v1, %v1801_v2 }
0x1671   :  { %v1813_v17 = vpack.c.bf16 %v1807_v4, %v1806_v3 }
0x1673   :  { %2582 = vmatmul.mubr.msk.bf16.vlgmr.msra.gmra.mrb[40].mxu1 %vm254_vm1, %v1813_v17 }
0x1674   :  { %2601 = vmatprep.mubr.msk.bf16.mxu1 %vm2766_vm2, %v2765_v31  ;;  %2598 = vmatpush3.bf16.msra.mxu1 %v2645_v58 }
0x1675   :  { %2599 = vmatprep.subr.bf16.mxu1 %v2765_v31 }
0x1678   :  { %2600 = vmatpush3.bf16.msra.mxu1 %v2646_v61 }
0x1679   :  { %2605 = vmatprep.subr.bf16.mxu1 %v2765_v31 }
0x1746   :  { %v1867_v53 = vpop.f32.mrb[40].mxu1 }
0x1747   :  { %v1868_v12 = vadd.f32 %v1867_v53, %v1817_v10  ;;  %v2583_v13 = vpop.f32.mrb[41].mxu1 }
0x1748   :  { %v1870_v15 = vpop.f32.mrb[42].mxu1 }
0x1749   :  { %v1876_v16 = vmul.f32 0.044715, %v1868_v12  ;;  %v1871_v19 = vadd.f32 %v1870_v15, %v1817_v10  ;;  %v2584_v20 = vpop.f32.mrb[43].mxu1  ;;  %v1874_v32 = vmul.f32 0.5, %v1868_v12 }
0x174b   :  { %v1878_v22 = vmul.f32 %v1876_v16, %v1868_v12  ;;  %v1877_v23 = vmul.f32 0.044715, %v1871_v19  ;;  %v1875_v33 = vmul.f32 0.5, %v1871_v19 }
0x174d   :  { %v1880_v52 = vmul.f32 %v1878_v22, %v1868_v12  ;;  %v1879_v25 = vmul.f32 %v1877_v23, %v1871_v19 }
0x174f   :  { %v1882_v26 = vadd.f32 %v1880_v52, %v1868_v12  ;;  %v1881_v27 = vmul.f32 %v1879_v25, %v1871_v19 }
0x1751   :  { %v1884_v47 = vmul.f32 0.7978846, %v1882_v26  ;;  %v1883_v48 = vadd.f32 %v1881_v27, %v1871_v19 }
0x1753   :  { %2701 = vtanh.f32 %v1884_v47  ;;  %v1885_v28 = vmul.f32 0.7978846, %v1883_v48 }
0x1755   :  { %2703 = vtanh.f32 %v1885_v28 }
0x175d   :  { %v2702_v29 = vpop.eup %2701 }
0x175e   :  { %v1888_v56 = vadd.f32 1.0, %v2702_v29 }
0x175f   :  { %v2704_v30 = vpop.eup %2703 }
0x1760   :  { %v1889_v34 = vadd.f32 1.0, %v2704_v30  ;;  %v1890_v35 = vmul.f32 %v1888_v56, %v1874_v32 }
0x1762   :  { %v1891_v37 = vmul.f32 %v1889_v34, %v1875_v33 }
0x1764   :  { %v1901_v62 = vpack.c.bf16 %v1891_v37, %v1890_v35 }
0x1766   :  { %2594 = vmatmul.mubr.msk.bf16.vlgmr.msra.gmra.mrb[48].mxu0 %vm1087_vm7, %v1901_v62 }
0x1839   :  { %v1967_v40 = vpop.f32.mrb[48].mxu0 }
0x183a   :  { %v1968_v5 = vadd.f32 %v1967_v40, %v1905_v38  ;;  %v2595_v41 = vpop.f32.mrb[49].mxu0 }
0x183b   :  { %v1970_v42 = vpop.f32.mrb[50].mxu0 }
0x183c   :  { %v1971_v43 = vadd.f32 %v1970_v42, %v1905_v38  ;;  %v2596_v44 = vpop.f32.mrb[51].mxu0  ;;  %v1974_v45 = vadd.f32 %v1968_v5, %v1806_v3 }
0x183e   :  { %v1976_v8 = vsel %vm254_vm1, %v1974_v45, 0.0  ;;  %v1975_v9 = vadd.f32 %v1971_v43, %v1807_v4 }
0x183f   :  { %1977 = vadd.xlane.f32.xlu1 %v1976_v8 }
0x1840   :  { %v1979_v46 = vsel %vm254_vm1, %v1975_v9, 0.0 }
0x1841   :  { %1980 = vadd.xlane.f32.xlu0 %v1979_v46 }
0x18cc   :  { %v1978_v14 = vpop.xlane.xlu1 %1977 }
0x18cd   :  { %v1982_v59 = vmul.f32 0.03125, %v1978_v14 }
0x18ce   :  { %v1981_v49 = vpop.xlane.xlu0 %1980 }
0x18cf   :  { %v1984_v18 = vsub.f32 %v1974_v45, %v1982_v59  ;;  %v1983_v50 = vmul.f32 0.03125, %v1981_v49 }
0x18d1   :  { %v1985_v24 = vsub.f32 %v1975_v9, %v1983_v50  ;;  %v1986_v54 = vmul.f32 %v1984_v18, %v1984_v18 }
0x18d3   :  { %v1988_v21 = vsel %vm254_vm1, %v1986_v54, 0.0  ;;  %v1987_v55 = vmul.f32 %v1985_v24, %v1985_v24 }
0x18d4   :  { %1989 = vadd.xlane.f32.xlu1 %v1988_v21 }
0x18d5   :  { %v1991_v57 = vsel %vm254_vm1, %v1987_v55, 0.0 }
0x18d6   :  { %1992 = vadd.xlane.f32.xlu0 %v1991_v57 }
0x1961   :  { %v1990_v0 = vpop.xlane.xlu1 %1989 }
0x1962   :  { %v1994_v1 = vmul.f32 0.03125, %v1990_v0 }
0x1963   :  { %v1993_v2 = vpop.xlane.xlu0 %1992 }
0x1964   :  { %v1996_v3 = vadd.f32 1e-12, %v1994_v1  ;;  %v1995_v4 = vmul.f32 0.03125, %v1993_v2 }
0x1966   :  { %2705 = vrsqrt.f32 %v1996_v3  ;;  %v1997_v17 = vadd.f32 1e-12, %v1995_v4 }
0x1968   :  { %2707 = vrsqrt.f32 %v1997_v17 }
0x1970   :  { %v2706_v6 = vpop.eup %2705 }
0x1971   :  { %v2000_v7 = vmul.f32 %v2706_v6, %v1984_v18 }
0x1972   :  { %v2708_v10 = vpop.eup %2707 }
0x1973   :  { %v2006_v53 = vmul.f32 %v2005_v36, %v2000_v7  ;;  %v2001_v12 = vmul.f32 %v2708_v10, %v1985_v24 }
0x1975   :  { %v2012_v13 = vadd.f32 %v2011_v39, %v2006_v53  ;;  %v2007_v15 = vmul.f32 %v2005_v36, %v2001_v12 }
0x1977   :  { %v2013_v16 = vadd.f32 %v2011_v39, %v2007_v15  ;;  %v2018_v19 = vpack.c.bf16 %v2012_v13, %v2012_v13 }
0x1979   :  { %v2019_v20 = vpack.c.bf16 %v2013_v16, %v2013_v16  ;;  %v2027_v23 = vunpack.c.l.b16 %v2018_v19 }
0x197b   :  { %v2028_v22 = vunpack.c.l.b16 %v2019_v20 }
0x197d   :  { %v2029_v52 = vrot.slane %v2028_v22, 7 }
0x197f   :  { %v2031_v25 = vsel %vm2030_vm8, %v2029_v52, %v2027_v23 }
0x1980   :  { %v2032_v60 = vpack.c.b16 %v2031_v25, %v2031_v25 }
0x1982   :  { %2602 = vmatmul.mubr.msk.bf16.vlgmr.msra.gmra.mrb[44].mxu1 %vm254_vm1, %v2032_v60 }
0x1983   :  { %2609 = vmatprep.mubr.msk.bf16.mxu1 %vm2766_vm2, %v2765_v31  ;;  %2606 = vmatpush3.bf16.msra.mxu1 %v2647_v51 }
0x1984   :  { %2607 = vmatprep.subr.bf16.mxu1 %v2765_v31  ;;  %v2362_v31 = vld [vmem:[%s3482_s4 + $0x3] ss:$0 sm:$0xff] }
0x1987   :  { %2608 = vmatpush3.bf16.msra.mxu1 %v2648_v63 }
0x1a55   :  { %v2082_v26 = vpop.f32.mrb[44].mxu1 }
0x1a56   :  { %v2083_v27 = vadd.f32 %v2351_v11, %v2082_v26  ;;  %v2603_v47 = vpop.f32.mrb[45].mxu1 }
0x1a57   :  { %v2085_v48 = vpop.f32.mrb[46].mxu1 }
0x1a58   :  { %2709 = vtanh.f32 %v2083_v27  ;;  %v2604_v28 = vpop.f32.mrb[47].mxu1 }
0x1a62   :  { %v2710_v29 = vpop.eup %2709 }
0x1a63   :  { %v2094_v56 = vpack.c.bf16 %v2710_v29, %v2710_v29 }
0x1a65   :  { %2610 = vmatmul.mubr.msk.bf16.vlgmr.msra.gmra.mrb[48].mxu1 %vm254_vm1, %v2094_v56 }
0x1b38   :  { %v2144_v30 = vpop.f32.mrb[48].mxu1 }
0x1b39   :  { %v2155_v32 = vadd.f32 %v2362_v31, %v2144_v30  ;;  %v2611_v33 = vpop.f32.mrb[49].mxu1 }
0x1b3a   :  { %v2147_v34 = vpop.f32.mrb[50].mxu1 }
0x1b3b   :  { %v2612_v35 = vpop.f32.mrb[51].mxu1  ;;  %2157 = vst.msk [vmem:[#allocation9] sm:$0x3] %vm2156_vm9, %v2155_v32 }
0x1b3c   :  { %2746 = shalt.err (!%p2743_p0)
}
0x1b3d   :  { %s3498_s4 = sld [smem:[#allocation15_spill]] }
0x1b43   :  { %s2747_s7 = scalar_lea.hbm %s3498_s4, 32 }
0x1b44   :  { %p2748_p1 = scmp.ne.s32.totalorder %s3498_s4, %s2747_s7  ;;  %p2751_p2 = scmp.lt.u32.totalorder %s2747_s7, %s3498_s4 }
0x1b46   :  { %p2753_p3 = pnand %p2751_p2, %p2748_p1 }
0x1b48   :  { %2756 = shalt.err (!%p2753_p3)
}
0x1b49   :  { %2167 = dma.vmem_to_hbm [thread:$0]  %s2165_s5, 32, %s3498_s4, [#allocation5]  }
0x1b4a   :  { %2761 = dma.done.wait [#allocation5], 32  }
0x1b4b   :  { %2762 = vsyncadd [#allocation5], 4294967264 }
0x1b4c   :  { %2171 = vsyncpa [#allocation5], 1 }
0x1b4d   :  { %2172 = vsyncpa [#allocation6], 1 }
0x1b4e   :  { %2173 = vsyncpa [#allocation8], 1 }

</bundles_post_ra>
